<compile_context>
chip_gen: v5e
topology: v5e:2x2
jax: 0.10.0
libtpu: 0.0.40
codegen_flags: <defaults>
</compile_context>

<pallas_src>
import jax
import jax.numpy as jnp
from jax.experimental import pallas as pl
from jax.experimental.pallas import tpu as pltpu


# --------------------- fused 2-layer LSTM + heads kernel ----------------------
def _fused_mt_rnn_kernel(x_ref, len_ref, wih1_ref, whh1_ref, b1_ref,
                         w2_ref, b2_ref, whead_ref, bhead_ref,
                         out_ref, gx_scr, z_scr):
    """Single-invocation kernel.

    x_ref     : (T*B, D)   time-major flattened kinematics
    len_ref   : (B, 1)     int32 sequence lengths
    wih1_ref  : (D, 4H)    layer-1 input weights (transposed)
    whh1_ref  : (H, 4H)    layer-1 recurrent weights (transposed)
    b1_ref    : (1, 4H)    layer-1 fused bias (b_ih + b_hh)
    w2_ref    : (2H, 4H)   layer-2 stacked [W_ih2; W_hh2] (transposed)
    b2_ref    : (1, 4H)    layer-2 fused bias
    whead_ref : (H, Ct)    concatenated head weights (transposed)
    bhead_ref : (1, Ct)    concatenated head biases
    out_ref   : (T*B, Ct)  fused head outputs
    gx_scr    : (T*B, 4H)  VMEM scratch: hoisted layer-1 input projection
    z_scr     : (T*B, H)   VMEM scratch: (-1)-padded layer-2 output
    """
    B = len_ref.shape[0]
    H = whh1_ref.shape[0]
    TB = x_ref.shape[0]
    T = TB // B

    # ---- hoisted layer-1 input projection: ONE (T*B, D) x (D, 4H) matmul ----
    gx_scr[...] = jnp.dot(x_ref[...], wih1_ref[...],
                          preferred_element_type=jnp.float32)

    lengths = len_ref[...]          # (B, 1) int32
    whh1 = whh1_ref[...]
    w2 = w2_ref[...]
    b1 = b1_ref[...]
    b2 = b2_ref[...]

    def lstm_cell(gates, c_prev):
        # Full-tile activations (2 EUP pushes on the whole (B, 4H) vreg),
        # then static lane slices per gate.  PyTorch gate order: i, f, g, o.
        sig = jax.nn.sigmoid(gates)
        th = jnp.tanh(gates)
        i = sig[:, 0 * H:1 * H]
        f = sig[:, 1 * H:2 * H]
        g = th[:, 2 * H:3 * H]
        o = sig[:, 3 * H:4 * H]
        c_new = f * c_prev + i * g
        h_new = o * jnp.tanh(c_new)
        return h_new, c_new

    zeros = jnp.zeros((B, H), jnp.float32)
    h1, c1, h2, c2 = zeros, zeros, zeros, zeros

    # T is small and static -> fully unrolled recurrence, state carried in vregs.
    for t in range(T):
        m = lengths > t                                   # (B, 1) valid mask

        # layer 1: only the recurrent matmul is on the serial path
        gates1 = (gx_scr[pl.ds(t * B, B), :]
                  + jnp.dot(h1, whh1, preferred_element_type=jnp.float32)
                  + b1)
        h1n, c1n = lstm_cell(gates1, c1)
        h1 = jnp.where(m, h1n, h1)                        # freeze past seq end
        c1 = jnp.where(m, c1n, c1)

        # layer 2: single fused matmul [h1, h2] @ [W_ih2; W_hh2]
        xh = jnp.concatenate([h1, h2], axis=-1)           # (B, 2H)
        gates2 = jnp.dot(xh, w2, preferred_element_type=jnp.float32) + b2
        h2n, c2n = lstm_cell(gates2, c2)
        h2 = jnp.where(m, h2n, h2)
        c2 = jnp.where(m, c2n, c2)

        # pad_packed_sequence(padding_value=-1)
        z_scr[pl.ds(t * B, B), :] = jnp.where(m, h2n, -1.0)

    # ---- fused output heads: ONE (T*B, H) x (H, C_total) matmul ----
    out_ref[...] = (jnp.dot(z_scr[...], whead_ref[...],
                            preferred_element_type=jnp.float32)
                    + bhead_ref[...])


# ------------------------------- parameter init -------------------------------
def init_params(key, input_dim, hidden_dim, num_classes_list):
    H = hidden_dim
    s = 1.0 / float(H) ** 0.5
    k = key

    def u(kk, shape):
        return jax.random.uniform(kk, shape, jnp.float32, -s, s)

    # layer 1 (PyTorch layout: w_ih (4H, D), w_hh (4H, H))
    k, k1, k2, k3, k4 = jax.random.split(k, 5)
    w_ih1, w_hh1 = u(k1, (4 * H, input_dim)), u(k2, (4 * H, H))
    b_ih1, b_hh1 = u(k3, (4 * H,)), u(k4, (4 * H,))
    # layer 2
    k, k1, k2, k3, k4 = jax.random.split(k, 5)
    w_ih2, w_hh2 = u(k1, (4 * H, H)), u(k2, (4 * H, H))
    b_ih2, b_hh2 = u(k3, (4 * H,)), u(k4, (4 * H,))
    # output heads
    head_ws, head_bs = [], []
    for c in num_classes_list:
        k, k1, k2 = jax.random.split(k, 3)
        head_ws.append(u(k1, (c, H)))
        head_bs.append(u(k2, (c,)))

    return {
        "wih1": jnp.transpose(w_ih1),                                   # (D, 4H)
        "whh1": jnp.transpose(w_hh1),                                   # (H, 4H)
        "b1": (b_ih1 + b_hh1)[None, :],                                 # (1, 4H)
        "w2": jnp.concatenate([jnp.transpose(w_ih2),
                               jnp.transpose(w_hh2)], axis=0),          # (2H, 4H)
        "b2": (b_ih2 + b_hh2)[None, :],                                 # (1, 4H)
        "wheads": jnp.concatenate([jnp.transpose(w) for w in head_ws],
                                  axis=1),                              # (H, Ct)
        "bheads": jnp.concatenate(head_bs)[None, :],                    # (1, Ct)
        "num_classes_list": list(num_classes_list),
    }


# --------------------------------- forward -----------------------------------
def mt_rnn_dp_forward(params, rnn_inputs, lengths):
    """rnn_inputs: (B, input_dim, T) float32; lengths: python list of ints.
    Returns a list of (B, num_classes_k, max(lengths)) arrays, one per head."""
    B, D, _ = rnn_inputs.shape
    T_out = int(max(lengths))
    H = params["whh1"].shape[0]
    Ct = params["wheads"].shape[1]

    # permute(0,2,1) + time-major fused into one transpose; dropout (eval) = id.
    x_tbd = jnp.transpose(rnn_inputs, (2, 0, 1))[:T_out].astype(jnp.float32)
    x2d = x_tbd.reshape(T_out * B, D)                    # row t*B + b
    lengths_col = jnp.asarray(lengths, jnp.int32)[:, None]   # (B, 1)

    # Single-invocation kernel: no grid / no tiling -> every operand is staged
    # as one whole-array VMEM block (everything here is a few KiB).
    out2d = pl.pallas_call(
        _fused_mt_rnn_kernel,
        out_shape=jax.ShapeDtypeStruct((T_out * B, Ct), jnp.float32),
        scratch_shapes=[
            pltpu.VMEM((T_out * B, 4 * H), jnp.float32),   # hoisted X @ W_ih1
            pltpu.VMEM((T_out * B, H), jnp.float32),       # padded layer-2 output
        ],
    )(x2d, lengths_col, params["wih1"], params["whh1"], params["b1"],
      params["w2"], params["b2"], params["wheads"], params["bheads"])

    # (T*B, Ct) -> (B, Ct, T), then split per head (matches head(z).permute(0,2,1))
    out_bct = jnp.transpose(out2d.reshape(T_out, B, Ct), (1, 2, 0))
    outputs, start = [], 0
    for c in params["num_classes_list"]:
        outputs.append(out_bct[:, start:start + c, :])
        start += c
    return outputs


if __name__ == "__main__":
    key = jax.random.PRNGKey(0)
    B, input_dim, T = 2, 4, 8
    hidden_dim = 32
    num_classes_list = [6, 10]
    lengths = [8, 5]

    kin_key, p_key = jax.random.split(key)
    rnn_inputs = jax.random.normal(kin_key, (B, input_dim, T), jnp.float32)
    # side_inputs / top_inputs are unused for model_type='B' and omitted.

    params = init_params(p_key, input_dim, hidden_dim, num_classes_list)

    outs = mt_rnn_dp_forward(params, rnn_inputs, lengths)
    outs = jax.block_until_ready(outs)

    T_out = max(lengths)
    assert outs[0].shape == (B, num_classes_list[0], T_out), outs[0].shape
    assert outs[1].shape == (B, num_classes_list[1], T_out), outs[1].shape
    assert all(jnp.isfinite(o).all() for o in outs)
    print("KERNEL_OK")
</pallas_src>

<mosaic_0001>
module attributes {stable_mosaic.version = 11 : i64} {
  func.func @_fused_mt_rnn_kernel(%arg0: memref<16x4xf32, #tpu.memory_space<vmem>>, %arg1: memref<2x1xi32, #tpu.memory_space<vmem>>, %arg2: memref<4x128xf32, #tpu.memory_space<vmem>>, %arg3: memref<32x128xf32, #tpu.memory_space<vmem>>, %arg4: memref<1x128xf32, #tpu.memory_space<vmem>>, %arg5: memref<64x128xf32, #tpu.memory_space<vmem>>, %arg6: memref<1x128xf32, #tpu.memory_space<vmem>>, %arg7: memref<32x16xf32, #tpu.memory_space<vmem>>, %arg8: memref<1x16xf32, #tpu.memory_space<vmem>>, %arg9: memref<16x16xf32, #tpu.memory_space<vmem>>, %arg10: memref<16x128xf32, #tpu.memory_space<vmem>>, %arg11: memref<16x32xf32, #tpu.memory_space<vmem>>) attributes {dimension_semantics = [], scalar_prefetch = 0 : i64, scratch_operands = 2 : i64, tpu.core_type = #tpu.core_type<tc>} {
    %c0 = arith.constant 0 : index
    %c0_0 = arith.constant 0 : index
    %0 = vector.load %arg0[%c0, %c0_0] : memref<16x4xf32, #tpu.memory_space<vmem>>, vector<16x4xf32>
    %c0_1 = arith.constant 0 : index
    %c0_2 = arith.constant 0 : index
    %1 = vector.load %arg2[%c0_1, %c0_2] : memref<4x128xf32, #tpu.memory_space<vmem>>, vector<4x128xf32>
    %cst = arith.constant dense<0.000000e+00> : vector<16x128xf32>
    %2 = tpu.matmul %0, %1, %cst {dimension_numbers = #tpu.dot_dimension_numbers<[1], [0], [0], [1], [0, 0, 1, 1], [], []>} : vector<16x4xf32>, vector<4x128xf32>, vector<16x128xf32> -> vector<16x128xf32>
    %c0_3 = arith.constant 0 : index
    %c0_4 = arith.constant 0 : index
    %3 = vector.load %arg10[%c0_3, %c0_4] : memref<16x128xf32, #tpu.memory_space<vmem>>, vector<16x128xf32>
    tpu.vector_store %arg10[%c0_3, %c0_4], %2 {strides = array<i32>} : memref<16x128xf32, #tpu.memory_space<vmem>>, vector<16x128xf32>,
    %c0_5 = arith.constant 0 : index
    %c0_6 = arith.constant 0 : index
    %4 = vector.load %arg1[%c0_5, %c0_6] : memref<2x1xi32, #tpu.memory_space<vmem>>, vector<2x1xi32>
    %c0_7 = arith.constant 0 : index
    %c0_8 = arith.constant 0 : index
    %5 = vector.load %arg3[%c0_7, %c0_8] : memref<32x128xf32, #tpu.memory_space<vmem>>, vector<32x128xf32>
    %c0_9 = arith.constant 0 : index
    %c0_10 = arith.constant 0 : index
    %6 = vector.load %arg5[%c0_9, %c0_10] : memref<64x128xf32, #tpu.memory_space<vmem>>, vector<64x128xf32>
    %c0_11 = arith.constant 0 : index
    %c0_12 = arith.constant 0 : index
    %7 = vector.load %arg4[%c0_11, %c0_12] : memref<1x128xf32, #tpu.memory_space<vmem>>, vector<1x128xf32>
    %c0_13 = arith.constant 0 : index
    %c0_14 = arith.constant 0 : index
    %8 = vector.load %arg6[%c0_13, %c0_14] : memref<1x128xf32, #tpu.memory_space<vmem>>, vector<1x128xf32>
    %cst_15 = arith.constant 0.000000e+00 : f32
    %9 = vector.broadcast %cst_15 : f32 to vector<2x32xf32>
    %c0_i32 = arith.constant 0 : i32
    %10 = vector.broadcast %c0_i32 : i32 to vector<2x1xi32>
    %11 = arith.cmpi sgt, %4, %10 : vector<2x1xi32>
    %c0_16 = arith.constant 0 : index
    %c0_17 = arith.constant 0 : index
    %12 = vector.load %arg10[%c0_16, %c0_17] : memref<16x128xf32, #tpu.memory_space<vmem>>, vector<2x128xf32>
    %cst_18 = arith.constant dense<0.000000e+00> : vector<2x128xf32>
    %13 = tpu.matmul %9, %5, %cst_18 {dimension_numbers = #tpu.dot_dimension_numbers<[1], [0], [0], [1], [0, 0, 1, 1], [], []>} : vector<2x32xf32>, vector<32x128xf32>, vector<2x128xf32> -> vector<2x128xf32>
    %14 = arith.addf %12, %13 : vector<2x128xf32>
    %15 = vector.broadcast %7 : vector<1x128xf32> to vector<2x128xf32>
    %16 = arith.addf %14, %15 : vector<2x128xf32>
    %17 = arith.negf %16 : vector<2x128xf32>
    %18 = math.exp %17 : vector<2x128xf32>
    %cst_19 = arith.constant 1.000000e+00 : f32
    %19 = vector.broadcast %cst_19 : f32 to vector<2x128xf32>
    %20 = arith.addf %19, %18 : vector<2x128xf32>
    %21 = arith.divf %19, %20 : vector<2x128xf32>
    %22 = math.tanh %16 : vector<2x128xf32>
    %23 = vector.extract_strided_slice %21 {offsets = [0, 0], sizes = [2, 32], strides = [1, 1]} : vector<2x128xf32> to vector<2x32xf32>
    %24 = vector.extract_strided_slice %21 {offsets = [0, 32], sizes = [2, 32], strides = [1, 1]} : vector<2x128xf32> to vector<2x32xf32>
    %25 = vector.extract_strided_slice %22 {offsets = [0, 64], sizes = [2, 32], strides = [1, 1]} : vector<2x128xf32> to vector<2x32xf32>
    %26 = vector.extract_strided_slice %21 {offsets = [0, 96], sizes = [2, 32], strides = [1, 1]} : vector<2x128xf32> to vector<2x32xf32>
    %27 = arith.mulf %24, %9 : vector<2x32xf32>
    %28 = arith.mulf %23, %25 : vector<2x32xf32>
    %29 = arith.addf %27, %28 : vector<2x32xf32>
    %30 = math.tanh %29 : vector<2x32xf32>
    %31 = arith.mulf %26, %30 : vector<2x32xf32>
    %32 = vector.shape_cast %11 : vector<2x1xi1> to vector<2x1xi1>
    %33 = vector.broadcast %32 : vector<2x1xi1> to vector<2x32xi1>
    %34 = arith.select %33, %31, %9 : vector<2x32xi1>, vector<2x32xf32>
    %35 = vector.shape_cast %11 : vector<2x1xi1> to vector<2x1xi1>
    %36 = vector.broadcast %35 : vector<2x1xi1> to vector<2x32xi1>
    %37 = arith.select %36, %29, %9 : vector<2x32xi1>, vector<2x32xf32>
    %38 = tpu.concatenate %34, %9 in 1 : vector<2x32xf32>, vector<2x32xf32> -> vector<2x64xf32>
    %cst_20 = arith.constant dense<0.000000e+00> : vector<2x128xf32>
    %39 = tpu.matmul %38, %6, %cst_20 {dimension_numbers = #tpu.dot_dimension_numbers<[1], [0], [0], [1], [0, 0, 1, 1], [], []>} : vector<2x64xf32>, vector<64x128xf32>, vector<2x128xf32> -> vector<2x128xf32>
    %40 = vector.broadcast %8 : vector<1x128xf32> to vector<2x128xf32>
    %41 = arith.addf %39, %40 : vector<2x128xf32>
    %42 = arith.negf %41 : vector<2x128xf32>
    %43 = math.exp %42 : vector<2x128xf32>
    %cst_21 = arith.constant 1.000000e+00 : f32
    %44 = vector.broadcast %cst_21 : f32 to vector<2x128xf32>
    %45 = arith.addf %44, %43 : vector<2x128xf32>
    %46 = arith.divf %44, %45 : vector<2x128xf32>
    %47 = math.tanh %41 : vector<2x128xf32>
    %48 = vector.extract_strided_slice %46 {offsets = [0, 0], sizes = [2, 32], strides = [1, 1]} : vector<2x128xf32> to vector<2x32xf32>
    %49 = vector.extract_strided_slice %46 {offsets = [0, 32], sizes = [2, 32], strides = [1, 1]} : vector<2x128xf32> to vector<2x32xf32>
    %50 = vector.extract_strided_slice %47 {offsets = [0, 64], sizes = [2, 32], strides = [1, 1]} : vector<2x128xf32> to vector<2x32xf32>
    %51 = vector.extract_strided_slice %46 {offsets = [0, 96], sizes = [2, 32], strides = [1, 1]} : vector<2x128xf32> to vector<2x32xf32>
    %52 = arith.mulf %49, %9 : vector<2x32xf32>
    %53 = arith.mulf %48, %50 : vector<2x32xf32>
    %54 = arith.addf %52, %53 : vector<2x32xf32>
    %55 = math.tanh %54 : vector<2x32xf32>
    %56 = arith.mulf %51, %55 : vector<2x32xf32>
    %57 = vector.shape_cast %11 : vector<2x1xi1> to vector<2x1xi1>
    %58 = vector.broadcast %57 : vector<2x1xi1> to vector<2x32xi1>
    %59 = arith.select %58, %56, %9 : vector<2x32xi1>, vector<2x32xf32>
    %60 = vector.shape_cast %11 : vector<2x1xi1> to vector<2x1xi1>
    %61 = vector.broadcast %60 : vector<2x1xi1> to vector<2x32xi1>
    %62 = arith.select %61, %54, %9 : vector<2x32xi1>, vector<2x32xf32>
    %cst_22 = arith.constant -1.000000e+00 : f32
    %63 = vector.shape_cast %11 : vector<2x1xi1> to vector<2x1xi1>
    %64 = vector.broadcast %63 : vector<2x1xi1> to vector<2x32xi1>
    %65 = vector.broadcast %cst_22 : f32 to vector<2x32xf32>
    %66 = arith.select %64, %56, %65 : vector<2x32xi1>, vector<2x32xf32>
    %c0_23 = arith.constant 0 : index
    %c0_24 = arith.constant 0 : index
    %67 = vector.load %arg11[%c0_23, %c0_24] : memref<16x32xf32, #tpu.memory_space<vmem>>, vector<2x32xf32>
    tpu.vector_store %arg11[%c0_23, %c0_24], %66 {strides = array<i32>} : memref<16x32xf32, #tpu.memory_space<vmem>>, vector<2x32xf32>,
    %c1_i32 = arith.constant 1 : i32
    %68 = vector.broadcast %c1_i32 : i32 to vector<2x1xi32>
    %69 = arith.cmpi sgt, %4, %68 : vector<2x1xi32>
    %c2 = arith.constant 2 : index
    %c0_25 = arith.constant 0 : index
    %70 = vector.load %arg10[%c2, %c0_25] : memref<16x128xf32, #tpu.memory_space<vmem>>, vector<2x128xf32>
    %cst_26 = arith.constant dense<0.000000e+00> : vector<2x128xf32>
    %71 = tpu.matmul %34, %5, %cst_26 {dimension_numbers = #tpu.dot_dimension_numbers<[1], [0], [0], [1], [0, 0, 1, 1], [], []>} : vector<2x32xf32>, vector<32x128xf32>, vector<2x128xf32> -> vector<2x128xf32>
    %72 = arith.addf %70, %71 : vector<2x128xf32>
    %73 = vector.broadcast %7 : vector<1x128xf32> to vector<2x128xf32>
    %74 = arith.addf %72, %73 : vector<2x128xf32>
    %75 = arith.negf %74 : vector<2x128xf32>
    %76 = math.exp %75 : vector<2x128xf32>
    %cst_27 = arith.constant 1.000000e+00 : f32
    %77 = vector.broadcast %cst_27 : f32 to vector<2x128xf32>
    %78 = arith.addf %77, %76 : vector<2x128xf32>
    %79 = arith.divf %77, %78 : vector<2x128xf32>
    %80 = math.tanh %74 : vector<2x128xf32>
    %81 = vector.extract_strided_slice %79 {offsets = [0, 0], sizes = [2, 32], strides = [1, 1]} : vector<2x128xf32> to vector<2x32xf32>
    %82 = vector.extract_strided_slice %79 {offsets = [0, 32], sizes = [2, 32], strides = [1, 1]} : vector<2x128xf32> to vector<2x32xf32>
    %83 = vector.extract_strided_slice %80 {offsets = [0, 64], sizes = [2, 32], strides = [1, 1]} : vector<2x128xf32> to vector<2x32xf32>
    %84 = vector.extract_strided_slice %79 {offsets = [0, 96], sizes = [2, 32], strides = [1, 1]} : vector<2x128xf32> to vector<2x32xf32>
    %85 = arith.mulf %82, %37 : vector<2x32xf32>
    %86 = arith.mulf %81, %83 : vector<2x32xf32>
    %87 = arith.addf %85, %86 : vector<2x32xf32>
    %88 = math.tanh %87 : vector<2x32xf32>
    %89 = arith.mulf %84, %88 : vector<2x32xf32>
    %90 = vector.shape_cast %69 : vector<2x1xi1> to vector<2x1xi1>
    %91 = vector.broadcast %90 : vector<2x1xi1> to vector<2x32xi1>
    %92 = arith.select %91, %89, %34 : vector<2x32xi1>, vector<2x32xf32>
    %93 = vector.shape_cast %69 : vector<2x1xi1> to vector<2x1xi1>
    %94 = vector.broadcast %93 : vector<2x1xi1> to vector<2x32xi1>
    %95 = arith.select %94, %87, %37 : vector<2x32xi1>, vector<2x32xf32>
    %96 = tpu.concatenate %92, %59 in 1 : vector<2x32xf32>, vector<2x32xf32> -> vector<2x64xf32>
    %cst_28 = arith.constant dense<0.000000e+00> : vector<2x128xf32>
    %97 = tpu.matmul %96, %6, %cst_28 {dimension_numbers = #tpu.dot_dimension_numbers<[1], [0], [0], [1], [0, 0, 1, 1], [], []>} : vector<2x64xf32>, vector<64x128xf32>, vector<2x128xf32> -> vector<2x128xf32>
    %98 = vector.broadcast %8 : vector<1x128xf32> to vector<2x128xf32>
    %99 = arith.addf %97, %98 : vector<2x128xf32>
    %100 = arith.negf %99 : vector<2x128xf32>
    %101 = math.exp %100 : vector<2x128xf32>
    %cst_29 = arith.constant 1.000000e+00 : f32
    %102 = vector.broadcast %cst_29 : f32 to vector<2x128xf32>
    %103 = arith.addf %102, %101 : vector<2x128xf32>
    %104 = arith.divf %102, %103 : vector<2x128xf32>
    %105 = math.tanh %99 : vector<2x128xf32>
    %106 = vector.extract_strided_slice %104 {offsets = [0, 0], sizes = [2, 32], strides = [1, 1]} : vector<2x128xf32> to vector<2x32xf32>
    %107 = vector.extract_strided_slice %104 {offsets = [0, 32], sizes = [2, 32], strides = [1, 1]} : vector<2x128xf32> to vector<2x32xf32>
    %108 = vector.extract_strided_slice %105 {offsets = [0, 64], sizes = [2, 32], strides = [1, 1]} : vector<2x128xf32> to vector<2x32xf32>
    %109 = vector.extract_strided_slice %104 {offsets = [0, 96], sizes = [2, 32], strides = [1, 1]} : vector<2x128xf32> to vector<2x32xf32>
    %110 = arith.mulf %107, %62 : vector<2x32xf32>
    %111 = arith.mulf %106, %108 : vector<2x32xf32>
    %112 = arith.addf %110, %111 : vector<2x32xf32>
    %113 = math.tanh %112 : vector<2x32xf32>
    %114 = arith.mulf %109, %113 : vector<2x32xf32>
    %115 = vector.shape_cast %69 : vector<2x1xi1> to vector<2x1xi1>
    %116 = vector.broadcast %115 : vector<2x1xi1> to vector<2x32xi1>
    %117 = arith.select %116, %114, %59 : vector<2x32xi1>, vector<2x32xf32>
    %118 = vector.shape_cast %69 : vector<2x1xi1> to vector<2x1xi1>
    %119 = vector.broadcast %118 : vector<2x1xi1> to vector<2x32xi1>
    %120 = arith.select %119, %112, %62 : vector<2x32xi1>, vector<2x32xf32>
    %cst_30 = arith.constant -1.000000e+00 : f32
    %121 = vector.shape_cast %69 : vector<2x1xi1> to vector<2x1xi1>
    %122 = vector.broadcast %121 : vector<2x1xi1> to vector<2x32xi1>
    %123 = vector.broadcast %cst_30 : f32 to vector<2x32xf32>
    %124 = arith.select %122, %114, %123 : vector<2x32xi1>, vector<2x32xf32>
    %c2_31 = arith.constant 2 : index
    %c0_32 = arith.constant 0 : index
    %125 = vector.load %arg11[%c2_31, %c0_32] : memref<16x32xf32, #tpu.memory_space<vmem>>, vector<2x32xf32>
    tpu.vector_store %arg11[%c2_31, %c0_32], %124 {strides = array<i32>} : memref<16x32xf32, #tpu.memory_space<vmem>>, vector<2x32xf32>,
    %c2_i32 = arith.constant 2 : i32
    %126 = vector.broadcast %c2_i32 : i32 to vector<2x1xi32>
    %127 = arith.cmpi sgt, %4, %126 : vector<2x1xi32>
    %c4 = arith.constant 4 : index
    %c0_33 = arith.constant 0 : index
    %128 = vector.load %arg10[%c4, %c0_33] : memref<16x128xf32, #tpu.memory_space<vmem>>, vector<2x128xf32>
    %cst_34 = arith.constant dense<0.000000e+00> : vector<2x128xf32>
    %129 = tpu.matmul %92, %5, %cst_34 {dimension_numbers = #tpu.dot_dimension_numbers<[1], [0], [0], [1], [0, 0, 1, 1], [], []>} : vector<2x32xf32>, vector<32x128xf32>, vector<2x128xf32> -> vector<2x128xf32>
    %130 = arith.addf %128, %129 : vector<2x128xf32>
    %131 = vector.broadcast %7 : vector<1x128xf32> to vector<2x128xf32>
    %132 = arith.addf %130, %131 : vector<2x128xf32>
    %133 = arith.negf %132 : vector<2x128xf32>
    %134 = math.exp %133 : vector<2x128xf32>
    %cst_35 = arith.constant 1.000000e+00 : f32
    %135 = vector.broadcast %cst_35 : f32 to vector<2x128xf32>
    %136 = arith.addf %135, %134 : vector<2x128xf32>
    %137 = arith.divf %135, %136 : vector<2x128xf32>
    %138 = math.tanh %132 : vector<2x128xf32>
    %139 = vector.extract_strided_slice %137 {offsets = [0, 0], sizes = [2, 32], strides = [1, 1]} : vector<2x128xf32> to vector<2x32xf32>
    %140 = vector.extract_strided_slice %137 {offsets = [0, 32], sizes = [2, 32], strides = [1, 1]} : vector<2x128xf32> to vector<2x32xf32>
    %141 = vector.extract_strided_slice %138 {offsets = [0, 64], sizes = [2, 32], strides = [1, 1]} : vector<2x128xf32> to vector<2x32xf32>
    %142 = vector.extract_strided_slice %137 {offsets = [0, 96], sizes = [2, 32], strides = [1, 1]} : vector<2x128xf32> to vector<2x32xf32>
    %143 = arith.mulf %140, %95 : vector<2x32xf32>
    %144 = arith.mulf %139, %141 : vector<2x32xf32>
    %145 = arith.addf %143, %144 : vector<2x32xf32>
    %146 = math.tanh %145 : vector<2x32xf32>
    %147 = arith.mulf %142, %146 : vector<2x32xf32>
    %148 = vector.shape_cast %127 : vector<2x1xi1> to vector<2x1xi1>
    %149 = vector.broadcast %148 : vector<2x1xi1> to vector<2x32xi1>
    %150 = arith.select %149, %147, %92 : vector<2x32xi1>, vector<2x32xf32>
    %151 = vector.shape_cast %127 : vector<2x1xi1> to vector<2x1xi1>
    %152 = vector.broadcast %151 : vector<2x1xi1> to vector<2x32xi1>
    %153 = arith.select %152, %145, %95 : vector<2x32xi1>, vector<2x32xf32>
    %154 = tpu.concatenate %150, %117 in 1 : vector<2x32xf32>, vector<2x32xf32> -> vector<2x64xf32>
    %cst_36 = arith.constant dense<0.000000e+00> : vector<2x128xf32>
    %155 = tpu.matmul %154, %6, %cst_36 {dimension_numbers = #tpu.dot_dimension_numbers<[1], [0], [0], [1], [0, 0, 1, 1], [], []>} : vector<2x64xf32>, vector<64x128xf32>, vector<2x128xf32> -> vector<2x128xf32>
    %156 = vector.broadcast %8 : vector<1x128xf32> to vector<2x128xf32>
    %157 = arith.addf %155, %156 : vector<2x128xf32>
    %158 = arith.negf %157 : vector<2x128xf32>
    %159 = math.exp %158 : vector<2x128xf32>
    %cst_37 = arith.constant 1.000000e+00 : f32
    %160 = vector.broadcast %cst_37 : f32 to vector<2x128xf32>
    %161 = arith.addf %160, %159 : vector<2x128xf32>
    %162 = arith.divf %160, %161 : vector<2x128xf32>
    %163 = math.tanh %157 : vector<2x128xf32>
    %164 = vector.extract_strided_slice %162 {offsets = [0, 0], sizes = [2, 32], strides = [1, 1]} : vector<2x128xf32> to vector<2x32xf32>
    %165 = vector.extract_strided_slice %162 {offsets = [0, 32], sizes = [2, 32], strides = [1, 1]} : vector<2x128xf32> to vector<2x32xf32>
    %166 = vector.extract_strided_slice %163 {offsets = [0, 64], sizes = [2, 32], strides = [1, 1]} : vector<2x128xf32> to vector<2x32xf32>
    %167 = vector.extract_strided_slice %162 {offsets = [0, 96], sizes = [2, 32], strides = [1, 1]} : vector<2x128xf32> to vector<2x32xf32>
    %168 = arith.mulf %165, %120 : vector<2x32xf32>
    %169 = arith.mulf %164, %166 : vector<2x32xf32>
    %170 = arith.addf %168, %169 : vector<2x32xf32>
    %171 = math.tanh %170 : vector<2x32xf32>
    %172 = arith.mulf %167, %171 : vector<2x32xf32>
    %173 = vector.shape_cast %127 : vector<2x1xi1> to vector<2x1xi1>
    %174 = vector.broadcast %173 : vector<2x1xi1> to vector<2x32xi1>
    %175 = arith.select %174, %172, %117 : vector<2x32xi1>, vector<2x32xf32>
    %176 = vector.shape_cast %127 : vector<2x1xi1> to vector<2x1xi1>
    %177 = vector.broadcast %176 : vector<2x1xi1> to vector<2x32xi1>
    %178 = arith.select %177, %170, %120 : vector<2x32xi1>, vector<2x32xf32>
    %cst_38 = arith.constant -1.000000e+00 : f32
    %179 = vector.shape_cast %127 : vector<2x1xi1> to vector<2x1xi1>
    %180 = vector.broadcast %179 : vector<2x1xi1> to vector<2x32xi1>
    %181 = vector.broadcast %cst_38 : f32 to vector<2x32xf32>
    %182 = arith.select %180, %172, %181 : vector<2x32xi1>, vector<2x32xf32>
    %c4_39 = arith.constant 4 : index
    %c0_40 = arith.constant 0 : index
    %183 = vector.load %arg11[%c4_39, %c0_40] : memref<16x32xf32, #tpu.memory_space<vmem>>, vector<2x32xf32>
    tpu.vector_store %arg11[%c4_39, %c0_40], %182 {strides = array<i32>} : memref<16x32xf32, #tpu.memory_space<vmem>>, vector<2x32xf32>,
    %c3_i32 = arith.constant 3 : i32
    %184 = vector.broadcast %c3_i32 : i32 to vector<2x1xi32>
    %185 = arith.cmpi sgt, %4, %184 : vector<2x1xi32>
    %c6 = arith.constant 6 : index
    %c0_41 = arith.constant 0 : index
    %186 = vector.load %arg10[%c6, %c0_41] : memref<16x128xf32, #tpu.memory_space<vmem>>, vector<2x128xf32>
    %cst_42 = arith.constant dense<0.000000e+00> : vector<2x128xf32>
    %187 = tpu.matmul %150, %5, %cst_42 {dimension_numbers = #tpu.dot_dimension_numbers<[1], [0], [0], [1], [0, 0, 1, 1], [], []>} : vector<2x32xf32>, vector<32x128xf32>, vector<2x128xf32> -> vector<2x128xf32>
    %188 = arith.addf %186, %187 : vector<2x128xf32>
    %189 = vector.broadcast %7 : vector<1x128xf32> to vector<2x128xf32>
    %190 = arith.addf %188, %189 : vector<2x128xf32>
    %191 = arith.negf %190 : vector<2x128xf32>
    %192 = math.exp %191 : vector<2x128xf32>
    %cst_43 = arith.constant 1.000000e+00 : f32
    %193 = vector.broadcast %cst_43 : f32 to vector<2x128xf32>
    %194 = arith.addf %193, %192 : vector<2x128xf32>
    %195 = arith.divf %193, %194 : vector<2x128xf32>
    %196 = math.tanh %190 : vector<2x128xf32>
    %197 = vector.extract_strided_slice %195 {offsets = [0, 0], sizes = [2, 32], strides = [1, 1]} : vector<2x128xf32> to vector<2x32xf32>
    %198 = vector.extract_strided_slice %195 {offsets = [0, 32], sizes = [2, 32], strides = [1, 1]} : vector<2x128xf32> to vector<2x32xf32>
    %199 = vector.extract_strided_slice %196 {offsets = [0, 64], sizes = [2, 32], strides = [1, 1]} : vector<2x128xf32> to vector<2x32xf32>
    %200 = vector.extract_strided_slice %195 {offsets = [0, 96], sizes = [2, 32], strides = [1, 1]} : vector<2x128xf32> to vector<2x32xf32>
    %201 = arith.mulf %198, %153 : vector<2x32xf32>
    %202 = arith.mulf %197, %199 : vector<2x32xf32>
    %203 = arith.addf %201, %202 : vector<2x32xf32>
    %204 = math.tanh %203 : vector<2x32xf32>
    %205 = arith.mulf %200, %204 : vector<2x32xf32>
    %206 = vector.shape_cast %185 : vector<2x1xi1> to vector<2x1xi1>
    %207 = vector.broadcast %206 : vector<2x1xi1> to vector<2x32xi1>
    %208 = arith.select %207, %205, %150 : vector<2x32xi1>, vector<2x32xf32>
    %209 = vector.shape_cast %185 : vector<2x1xi1> to vector<2x1xi1>
    %210 = vector.broadcast %209 : vector<2x1xi1> to vector<2x32xi1>
    %211 = arith.select %210, %203, %153 : vector<2x32xi1>, vector<2x32xf32>
    %212 = tpu.concatenate %208, %175 in 1 : vector<2x32xf32>, vector<2x32xf32> -> vector<2x64xf32>
    %cst_44 = arith.constant dense<0.000000e+00> : vector<2x128xf32>
    %213 = tpu.matmul %212, %6, %cst_44 {dimension_numbers = #tpu.dot_dimension_numbers<[1], [0], [0], [1], [0, 0, 1, 1], [], []>} : vector<2x64xf32>, vector<64x128xf32>, vector<2x128xf32> -> vector<2x128xf32>
    %214 = vector.broadcast %8 : vector<1x128xf32> to vector<2x128xf32>
    %215 = arith.addf %213, %214 : vector<2x128xf32>
    %216 = arith.negf %215 : vector<2x128xf32>
    %217 = math.exp %216 : vector<2x128xf32>
    %cst_45 = arith.constant 1.000000e+00 : f32
    %218 = vector.broadcast %cst_45 : f32 to vector<2x128xf32>
    %219 = arith.addf %218, %217 : vector<2x128xf32>
    %220 = arith.divf %218, %219 : vector<2x128xf32>
    %221 = math.tanh %215 : vector<2x128xf32>
    %222 = vector.extract_strided_slice %220 {offsets = [0, 0], sizes = [2, 32], strides = [1, 1]} : vector<2x128xf32> to vector<2x32xf32>
    %223 = vector.extract_strided_slice %220 {offsets = [0, 32], sizes = [2, 32], strides = [1, 1]} : vector<2x128xf32> to vector<2x32xf32>
    %224 = vector.extract_strided_slice %221 {offsets = [0, 64], sizes = [2, 32], strides = [1, 1]} : vector<2x128xf32> to vector<2x32xf32>
    %225 = vector.extract_strided_slice %220 {offsets = [0, 96], sizes = [2, 32], strides = [1, 1]} : vector<2x128xf32> to vector<2x32xf32>
    %226 = arith.mulf %223, %178 : vector<2x32xf32>
    %227 = arith.mulf %222, %224 : vector<2x32xf32>
    %228 = arith.addf %226, %227 : vector<2x32xf32>
    %229 = math.tanh %228 : vector<2x32xf32>
    %230 = arith.mulf %225, %229 : vector<2x32xf32>
    %231 = vector.shape_cast %185 : vector<2x1xi1> to vector<2x1xi1>
    %232 = vector.broadcast %231 : vector<2x1xi1> to vector<2x32xi1>
    %233 = arith.select %232, %230, %175 : vector<2x32xi1>, vector<2x32xf32>
    %234 = vector.shape_cast %185 : vector<2x1xi1> to vector<2x1xi1>
    %235 = vector.broadcast %234 : vector<2x1xi1> to vector<2x32xi1>
    %236 = arith.select %235, %228, %178 : vector<2x32xi1>, vector<2x32xf32>
    %cst_46 = arith.constant -1.000000e+00 : f32
    %237 = vector.shape_cast %185 : vector<2x1xi1> to vector<2x1xi1>
    %238 = vector.broadcast %237 : vector<2x1xi1> to vector<2x32xi1>
    %239 = vector.broadcast %cst_46 : f32 to vector<2x32xf32>
    %240 = arith.select %238, %230, %239 : vector<2x32xi1>, vector<2x32xf32>
    %c6_47 = arith.constant 6 : index
    %c0_48 = arith.constant 0 : index
    %241 = vector.load %arg11[%c6_47, %c0_48] : memref<16x32xf32, #tpu.memory_space<vmem>>, vector<2x32xf32>
    tpu.vector_store %arg11[%c6_47, %c0_48], %240 {strides = array<i32>} : memref<16x32xf32, #tpu.memory_space<vmem>>, vector<2x32xf32>,
    %c4_i32 = arith.constant 4 : i32
    %242 = vector.broadcast %c4_i32 : i32 to vector<2x1xi32>
    %243 = arith.cmpi sgt, %4, %242 : vector<2x1xi32>
    %c8 = arith.constant 8 : index
    %c0_49 = arith.constant 0 : index
    %244 = vector.load %arg10[%c8, %c0_49] : memref<16x128xf32, #tpu.memory_space<vmem>>, vector<2x128xf32>
    %cst_50 = arith.constant dense<0.000000e+00> : vector<2x128xf32>
    %245 = tpu.matmul %208, %5, %cst_50 {dimension_numbers = #tpu.dot_dimension_numbers<[1], [0], [0], [1], [0, 0, 1, 1], [], []>} : vector<2x32xf32>, vector<32x128xf32>, vector<2x128xf32> -> vector<2x128xf32>
    %246 = arith.addf %244, %245 : vector<2x128xf32>
    %247 = vector.broadcast %7 : vector<1x128xf32> to vector<2x128xf32>
    %248 = arith.addf %246, %247 : vector<2x128xf32>
    %249 = arith.negf %248 : vector<2x128xf32>
    %250 = math.exp %249 : vector<2x128xf32>
    %cst_51 = arith.constant 1.000000e+00 : f32
    %251 = vector.broadcast %cst_51 : f32 to vector<2x128xf32>
    %252 = arith.addf %251, %250 : vector<2x128xf32>
    %253 = arith.divf %251, %252 : vector<2x128xf32>
    %254 = math.tanh %248 : vector<2x128xf32>
    %255 = vector.extract_strided_slice %253 {offsets = [0, 0], sizes = [2, 32], strides = [1, 1]} : vector<2x128xf32> to vector<2x32xf32>
    %256 = vector.extract_strided_slice %253 {offsets = [0, 32], sizes = [2, 32], strides = [1, 1]} : vector<2x128xf32> to vector<2x32xf32>
    %257 = vector.extract_strided_slice %254 {offsets = [0, 64], sizes = [2, 32], strides = [1, 1]} : vector<2x128xf32> to vector<2x32xf32>
    %258 = vector.extract_strided_slice %253 {offsets = [0, 96], sizes = [2, 32], strides = [1, 1]} : vector<2x128xf32> to vector<2x32xf32>
    %259 = arith.mulf %256, %211 : vector<2x32xf32>
    %260 = arith.mulf %255, %257 : vector<2x32xf32>
    %261 = arith.addf %259, %260 : vector<2x32xf32>
    %262 = math.tanh %261 : vector<2x32xf32>
    %263 = arith.mulf %258, %262 : vector<2x32xf32>
    %264 = vector.shape_cast %243 : vector<2x1xi1> to vector<2x1xi1>
    %265 = vector.broadcast %264 : vector<2x1xi1> to vector<2x32xi1>
    %266 = arith.select %265, %263, %208 : vector<2x32xi1>, vector<2x32xf32>
    %267 = vector.shape_cast %243 : vector<2x1xi1> to vector<2x1xi1>
    %268 = vector.broadcast %267 : vector<2x1xi1> to vector<2x32xi1>
    %269 = arith.select %268, %261, %211 : vector<2x32xi1>, vector<2x32xf32>
    %270 = tpu.concatenate %266, %233 in 1 : vector<2x32xf32>, vector<2x32xf32> -> vector<2x64xf32>
    %cst_52 = arith.constant dense<0.000000e+00> : vector<2x128xf32>
    %271 = tpu.matmul %270, %6, %cst_52 {dimension_numbers = #tpu.dot_dimension_numbers<[1], [0], [0], [1], [0, 0, 1, 1], [], []>} : vector<2x64xf32>, vector<64x128xf32>, vector<2x128xf32> -> vector<2x128xf32>
    %272 = vector.broadcast %8 : vector<1x128xf32> to vector<2x128xf32>
    %273 = arith.addf %271, %272 : vector<2x128xf32>
    %274 = arith.negf %273 : vector<2x128xf32>
    %275 = math.exp %274 : vector<2x128xf32>
    %cst_53 = arith.constant 1.000000e+00 : f32
    %276 = vector.broadcast %cst_53 : f32 to vector<2x128xf32>
    %277 = arith.addf %276, %275 : vector<2x128xf32>
    %278 = arith.divf %276, %277 : vector<2x128xf32>
    %279 = math.tanh %273 : vector<2x128xf32>
    %280 = vector.extract_strided_slice %278 {offsets = [0, 0], sizes = [2, 32], strides = [1, 1]} : vector<2x128xf32> to vector<2x32xf32>
    %281 = vector.extract_strided_slice %278 {offsets = [0, 32], sizes = [2, 32], strides = [1, 1]} : vector<2x128xf32> to vector<2x32xf32>
    %282 = vector.extract_strided_slice %279 {offsets = [0, 64], sizes = [2, 32], strides = [1, 1]} : vector<2x128xf32> to vector<2x32xf32>
    %283 = vector.extract_strided_slice %278 {offsets = [0, 96], sizes = [2, 32], strides = [1, 1]} : vector<2x128xf32> to vector<2x32xf32>
    %284 = arith.mulf %281, %236 : vector<2x32xf32>
    %285 = arith.mulf %280, %282 : vector<2x32xf32>
    %286 = arith.addf %284, %285 : vector<2x32xf32>
    %287 = math.tanh %286 : vector<2x32xf32>
    %288 = arith.mulf %283, %287 : vector<2x32xf32>
    %289 = vector.shape_cast %243 : vector<2x1xi1> to vector<2x1xi1>
    %290 = vector.broadcast %289 : vector<2x1xi1> to vector<2x32xi1>
    %291 = arith.select %290, %288, %233 : vector<2x32xi1>, vector<2x32xf32>
    %292 = vector.shape_cast %243 : vector<2x1xi1> to vector<2x1xi1>
    %293 = vector.broadcast %292 : vector<2x1xi1> to vector<2x32xi1>
    %294 = arith.select %293, %286, %236 : vector<2x32xi1>, vector<2x32xf32>
    %cst_54 = arith.constant -1.000000e+00 : f32
    %295 = vector.shape_cast %243 : vector<2x1xi1> to vector<2x1xi1>
    %296 = vector.broadcast %295 : vector<2x1xi1> to vector<2x32xi1>
    %297 = vector.broadcast %cst_54 : f32 to vector<2x32xf32>
    %298 = arith.select %296, %288, %297 : vector<2x32xi1>, vector<2x32xf32>
    %c8_55 = arith.constant 8 : index
    %c0_56 = arith.constant 0 : index
    %299 = vector.load %arg11[%c8_55, %c0_56] : memref<16x32xf32, #tpu.memory_space<vmem>>, vector<2x32xf32>
    tpu.vector_store %arg11[%c8_55, %c0_56], %298 {strides = array<i32>} : memref<16x32xf32, #tpu.memory_space<vmem>>, vector<2x32xf32>,
    %c5_i32 = arith.constant 5 : i32
    %300 = vector.broadcast %c5_i32 : i32 to vector<2x1xi32>
    %301 = arith.cmpi sgt, %4, %300 : vector<2x1xi32>
    %c10 = arith.constant 10 : index
    %c0_57 = arith.constant 0 : index
    %302 = vector.load %arg10[%c10, %c0_57] : memref<16x128xf32, #tpu.memory_space<vmem>>, vector<2x128xf32>
    %cst_58 = arith.constant dense<0.000000e+00> : vector<2x128xf32>
    %303 = tpu.matmul %266, %5, %cst_58 {dimension_numbers = #tpu.dot_dimension_numbers<[1], [0], [0], [1], [0, 0, 1, 1], [], []>} : vector<2x32xf32>, vector<32x128xf32>, vector<2x128xf32> -> vector<2x128xf32>
    %304 = arith.addf %302, %303 : vector<2x128xf32>
    %305 = vector.broadcast %7 : vector<1x128xf32> to vector<2x128xf32>
    %306 = arith.addf %304, %305 : vector<2x128xf32>
    %307 = arith.negf %306 : vector<2x128xf32>
    %308 = math.exp %307 : vector<2x128xf32>
    %cst_59 = arith.constant 1.000000e+00 : f32
    %309 = vector.broadcast %cst_59 : f32 to vector<2x128xf32>
    %310 = arith.addf %309, %308 : vector<2x128xf32>
    %311 = arith.divf %309, %310 : vector<2x128xf32>
    %312 = math.tanh %306 : vector<2x128xf32>
    %313 = vector.extract_strided_slice %311 {offsets = [0, 0], sizes = [2, 32], strides = [1, 1]} : vector<2x128xf32> to vector<2x32xf32>
    %314 = vector.extract_strided_slice %311 {offsets = [0, 32], sizes = [2, 32], strides = [1, 1]} : vector<2x128xf32> to vector<2x32xf32>
    %315 = vector.extract_strided_slice %312 {offsets = [0, 64], sizes = [2, 32], strides = [1, 1]} : vector<2x128xf32> to vector<2x32xf32>
    %316 = vector.extract_strided_slice %311 {offsets = [0, 96], sizes = [2, 32], strides = [1, 1]} : vector<2x128xf32> to vector<2x32xf32>
    %317 = arith.mulf %314, %269 : vector<2x32xf32>
    %318 = arith.mulf %313, %315 : vector<2x32xf32>
    %319 = arith.addf %317, %318 : vector<2x32xf32>
    %320 = math.tanh %319 : vector<2x32xf32>
    %321 = arith.mulf %316, %320 : vector<2x32xf32>
    %322 = vector.shape_cast %301 : vector<2x1xi1> to vector<2x1xi1>
    %323 = vector.broadcast %322 : vector<2x1xi1> to vector<2x32xi1>
    %324 = arith.select %323, %321, %266 : vector<2x32xi1>, vector<2x32xf32>
    %325 = vector.shape_cast %301 : vector<2x1xi1> to vector<2x1xi1>
    %326 = vector.broadcast %325 : vector<2x1xi1> to vector<2x32xi1>
    %327 = arith.select %326, %319, %269 : vector<2x32xi1>, vector<2x32xf32>
    %328 = tpu.concatenate %324, %291 in 1 : vector<2x32xf32>, vector<2x32xf32> -> vector<2x64xf32>
    %cst_60 = arith.constant dense<0.000000e+00> : vector<2x128xf32>
    %329 = tpu.matmul %328, %6, %cst_60 {dimension_numbers = #tpu.dot_dimension_numbers<[1], [0], [0], [1], [0, 0, 1, 1], [], []>} : vector<2x64xf32>, vector<64x128xf32>, vector<2x128xf32> -> vector<2x128xf32>
    %330 = vector.broadcast %8 : vector<1x128xf32> to vector<2x128xf32>
    %331 = arith.addf %329, %330 : vector<2x128xf32>
    %332 = arith.negf %331 : vector<2x128xf32>
    %333 = math.exp %332 : vector<2x128xf32>
    %cst_61 = arith.constant 1.000000e+00 : f32
    %334 = vector.broadcast %cst_61 : f32 to vector<2x128xf32>
    %335 = arith.addf %334, %333 : vector<2x128xf32>
    %336 = arith.divf %334, %335 : vector<2x128xf32>
    %337 = math.tanh %331 : vector<2x128xf32>
    %338 = vector.extract_strided_slice %336 {offsets = [0, 0], sizes = [2, 32], strides = [1, 1]} : vector<2x128xf32> to vector<2x32xf32>
    %339 = vector.extract_strided_slice %336 {offsets = [0, 32], sizes = [2, 32], strides = [1, 1]} : vector<2x128xf32> to vector<2x32xf32>
    %340 = vector.extract_strided_slice %337 {offsets = [0, 64], sizes = [2, 32], strides = [1, 1]} : vector<2x128xf32> to vector<2x32xf32>
    %341 = vector.extract_strided_slice %336 {offsets = [0, 96], sizes = [2, 32], strides = [1, 1]} : vector<2x128xf32> to vector<2x32xf32>
    %342 = arith.mulf %339, %294 : vector<2x32xf32>
    %343 = arith.mulf %338, %340 : vector<2x32xf32>
    %344 = arith.addf %342, %343 : vector<2x32xf32>
    %345 = math.tanh %344 : vector<2x32xf32>
    %346 = arith.mulf %341, %345 : vector<2x32xf32>
    %347 = vector.shape_cast %301 : vector<2x1xi1> to vector<2x1xi1>
    %348 = vector.broadcast %347 : vector<2x1xi1> to vector<2x32xi1>
    %349 = arith.select %348, %346, %291 : vector<2x32xi1>, vector<2x32xf32>
    %350 = vector.shape_cast %301 : vector<2x1xi1> to vector<2x1xi1>
    %351 = vector.broadcast %350 : vector<2x1xi1> to vector<2x32xi1>
    %352 = arith.select %351, %344, %294 : vector<2x32xi1>, vector<2x32xf32>
    %cst_62 = arith.constant -1.000000e+00 : f32
    %353 = vector.shape_cast %301 : vector<2x1xi1> to vector<2x1xi1>
    %354 = vector.broadcast %353 : vector<2x1xi1> to vector<2x32xi1>
    %355 = vector.broadcast %cst_62 : f32 to vector<2x32xf32>
    %356 = arith.select %354, %346, %355 : vector<2x32xi1>, vector<2x32xf32>
    %c10_63 = arith.constant 10 : index
    %c0_64 = arith.constant 0 : index
    %357 = vector.load %arg11[%c10_63, %c0_64] : memref<16x32xf32, #tpu.memory_space<vmem>>, vector<2x32xf32>
    tpu.vector_store %arg11[%c10_63, %c0_64], %356 {strides = array<i32>} : memref<16x32xf32, #tpu.memory_space<vmem>>, vector<2x32xf32>,
    %c6_i32 = arith.constant 6 : i32
    %358 = vector.broadcast %c6_i32 : i32 to vector<2x1xi32>
    %359 = arith.cmpi sgt, %4, %358 : vector<2x1xi32>
    %c12 = arith.constant 12 : index
    %c0_65 = arith.constant 0 : index
    %360 = vector.load %arg10[%c12, %c0_65] : memref<16x128xf32, #tpu.memory_space<vmem>>, vector<2x128xf32>
    %cst_66 = arith.constant dense<0.000000e+00> : vector<2x128xf32>
    %361 = tpu.matmul %324, %5, %cst_66 {dimension_numbers = #tpu.dot_dimension_numbers<[1], [0], [0], [1], [0, 0, 1, 1], [], []>} : vector<2x32xf32>, vector<32x128xf32>, vector<2x128xf32> -> vector<2x128xf32>
    %362 = arith.addf %360, %361 : vector<2x128xf32>
    %363 = vector.broadcast %7 : vector<1x128xf32> to vector<2x128xf32>
    %364 = arith.addf %362, %363 : vector<2x128xf32>
    %365 = arith.negf %364 : vector<2x128xf32>
    %366 = math.exp %365 : vector<2x128xf32>
    %cst_67 = arith.constant 1.000000e+00 : f32
    %367 = vector.broadcast %cst_67 : f32 to vector<2x128xf32>
    %368 = arith.addf %367, %366 : vector<2x128xf32>
    %369 = arith.divf %367, %368 : vector<2x128xf32>
    %370 = math.tanh %364 : vector<2x128xf32>
    %371 = vector.extract_strided_slice %369 {offsets = [0, 0], sizes = [2, 32], strides = [1, 1]} : vector<2x128xf32> to vector<2x32xf32>
    %372 = vector.extract_strided_slice %369 {offsets = [0, 32], sizes = [2, 32], strides = [1, 1]} : vector<2x128xf32> to vector<2x32xf32>
    %373 = vector.extract_strided_slice %370 {offsets = [0, 64], sizes = [2, 32], strides = [1, 1]} : vector<2x128xf32> to vector<2x32xf32>
    %374 = vector.extract_strided_slice %369 {offsets = [0, 96], sizes = [2, 32], strides = [1, 1]} : vector<2x128xf32> to vector<2x32xf32>
    %375 = arith.mulf %372, %327 : vector<2x32xf32>
    %376 = arith.mulf %371, %373 : vector<2x32xf32>
    %377 = arith.addf %375, %376 : vector<2x32xf32>
    %378 = math.tanh %377 : vector<2x32xf32>
    %379 = arith.mulf %374, %378 : vector<2x32xf32>
    %380 = vector.shape_cast %359 : vector<2x1xi1> to vector<2x1xi1>
    %381 = vector.broadcast %380 : vector<2x1xi1> to vector<2x32xi1>
    %382 = arith.select %381, %379, %324 : vector<2x32xi1>, vector<2x32xf32>
    %383 = vector.shape_cast %359 : vector<2x1xi1> to vector<2x1xi1>
    %384 = vector.broadcast %383 : vector<2x1xi1> to vector<2x32xi1>
    %385 = arith.select %384, %377, %327 : vector<2x32xi1>, vector<2x32xf32>
    %386 = tpu.concatenate %382, %349 in 1 : vector<2x32xf32>, vector<2x32xf32> -> vector<2x64xf32>
    %cst_68 = arith.constant dense<0.000000e+00> : vector<2x128xf32>
    %387 = tpu.matmul %386, %6, %cst_68 {dimension_numbers = #tpu.dot_dimension_numbers<[1], [0], [0], [1], [0, 0, 1, 1], [], []>} : vector<2x64xf32>, vector<64x128xf32>, vector<2x128xf32> -> vector<2x128xf32>
    %388 = vector.broadcast %8 : vector<1x128xf32> to vector<2x128xf32>
    %389 = arith.addf %387, %388 : vector<2x128xf32>
    %390 = arith.negf %389 : vector<2x128xf32>
    %391 = math.exp %390 : vector<2x128xf32>
    %cst_69 = arith.constant 1.000000e+00 : f32
    %392 = vector.broadcast %cst_69 : f32 to vector<2x128xf32>
    %393 = arith.addf %392, %391 : vector<2x128xf32>
    %394 = arith.divf %392, %393 : vector<2x128xf32>
    %395 = math.tanh %389 : vector<2x128xf32>
    %396 = vector.extract_strided_slice %394 {offsets = [0, 0], sizes = [2, 32], strides = [1, 1]} : vector<2x128xf32> to vector<2x32xf32>
    %397 = vector.extract_strided_slice %394 {offsets = [0, 32], sizes = [2, 32], strides = [1, 1]} : vector<2x128xf32> to vector<2x32xf32>
    %398 = vector.extract_strided_slice %395 {offsets = [0, 64], sizes = [2, 32], strides = [1, 1]} : vector<2x128xf32> to vector<2x32xf32>
    %399 = vector.extract_strided_slice %394 {offsets = [0, 96], sizes = [2, 32], strides = [1, 1]} : vector<2x128xf32> to vector<2x32xf32>
    %400 = arith.mulf %397, %352 : vector<2x32xf32>
    %401 = arith.mulf %396, %398 : vector<2x32xf32>
    %402 = arith.addf %400, %401 : vector<2x32xf32>
    %403 = math.tanh %402 : vector<2x32xf32>
    %404 = arith.mulf %399, %403 : vector<2x32xf32>
    %405 = vector.shape_cast %359 : vector<2x1xi1> to vector<2x1xi1>
    %406 = vector.broadcast %405 : vector<2x1xi1> to vector<2x32xi1>
    %407 = arith.select %406, %404, %349 : vector<2x32xi1>, vector<2x32xf32>
    %408 = vector.shape_cast %359 : vector<2x1xi1> to vector<2x1xi1>
    %409 = vector.broadcast %408 : vector<2x1xi1> to vector<2x32xi1>
    %410 = arith.select %409, %402, %352 : vector<2x32xi1>, vector<2x32xf32>
    %cst_70 = arith.constant -1.000000e+00 : f32
    %411 = vector.shape_cast %359 : vector<2x1xi1> to vector<2x1xi1>
    %412 = vector.broadcast %411 : vector<2x1xi1> to vector<2x32xi1>
    %413 = vector.broadcast %cst_70 : f32 to vector<2x32xf32>
    %414 = arith.select %412, %404, %413 : vector<2x32xi1>, vector<2x32xf32>
    %c12_71 = arith.constant 12 : index
    %c0_72 = arith.constant 0 : index
    %415 = vector.load %arg11[%c12_71, %c0_72] : memref<16x32xf32, #tpu.memory_space<vmem>>, vector<2x32xf32>
    tpu.vector_store %arg11[%c12_71, %c0_72], %414 {strides = array<i32>} : memref<16x32xf32, #tpu.memory_space<vmem>>, vector<2x32xf32>,
    %c7_i32 = arith.constant 7 : i32
    %416 = vector.broadcast %c7_i32 : i32 to vector<2x1xi32>
    %417 = arith.cmpi sgt, %4, %416 : vector<2x1xi32>
    %c14 = arith.constant 14 : index
    %c0_73 = arith.constant 0 : index
    %418 = vector.load %arg10[%c14, %c0_73] : memref<16x128xf32, #tpu.memory_space<vmem>>, vector<2x128xf32>
    %cst_74 = arith.constant dense<0.000000e+00> : vector<2x128xf32>
    %419 = tpu.matmul %382, %5, %cst_74 {dimension_numbers = #tpu.dot_dimension_numbers<[1], [0], [0], [1], [0, 0, 1, 1], [], []>} : vector<2x32xf32>, vector<32x128xf32>, vector<2x128xf32> -> vector<2x128xf32>
    %420 = arith.addf %418, %419 : vector<2x128xf32>
    %421 = vector.broadcast %7 : vector<1x128xf32> to vector<2x128xf32>
    %422 = arith.addf %420, %421 : vector<2x128xf32>
    %423 = arith.negf %422 : vector<2x128xf32>
    %424 = math.exp %423 : vector<2x128xf32>
    %cst_75 = arith.constant 1.000000e+00 : f32
    %425 = vector.broadcast %cst_75 : f32 to vector<2x128xf32>
    %426 = arith.addf %425, %424 : vector<2x128xf32>
    %427 = arith.divf %425, %426 : vector<2x128xf32>
    %428 = math.tanh %422 : vector<2x128xf32>
    %429 = vector.extract_strided_slice %427 {offsets = [0, 0], sizes = [2, 32], strides = [1, 1]} : vector<2x128xf32> to vector<2x32xf32>
    %430 = vector.extract_strided_slice %427 {offsets = [0, 32], sizes = [2, 32], strides = [1, 1]} : vector<2x128xf32> to vector<2x32xf32>
    %431 = vector.extract_strided_slice %428 {offsets = [0, 64], sizes = [2, 32], strides = [1, 1]} : vector<2x128xf32> to vector<2x32xf32>
    %432 = vector.extract_strided_slice %427 {offsets = [0, 96], sizes = [2, 32], strides = [1, 1]} : vector<2x128xf32> to vector<2x32xf32>
    %433 = arith.mulf %430, %385 : vector<2x32xf32>
    %434 = arith.mulf %429, %431 : vector<2x32xf32>
    %435 = arith.addf %433, %434 : vector<2x32xf32>
    %436 = math.tanh %435 : vector<2x32xf32>
    %437 = arith.mulf %432, %436 : vector<2x32xf32>
    %438 = vector.shape_cast %417 : vector<2x1xi1> to vector<2x1xi1>
    %439 = vector.broadcast %438 : vector<2x1xi1> to vector<2x32xi1>
    %440 = arith.select %439, %437, %382 : vector<2x32xi1>, vector<2x32xf32>
    %441 = tpu.concatenate %440, %407 in 1 : vector<2x32xf32>, vector<2x32xf32> -> vector<2x64xf32>
    %cst_76 = arith.constant dense<0.000000e+00> : vector<2x128xf32>
    %442 = tpu.matmul %441, %6, %cst_76 {dimension_numbers = #tpu.dot_dimension_numbers<[1], [0], [0], [1], [0, 0, 1, 1], [], []>} : vector<2x64xf32>, vector<64x128xf32>, vector<2x128xf32> -> vector<2x128xf32>
    %443 = vector.broadcast %8 : vector<1x128xf32> to vector<2x128xf32>
    %444 = arith.addf %442, %443 : vector<2x128xf32>
    %445 = arith.negf %444 : vector<2x128xf32>
    %446 = math.exp %445 : vector<2x128xf32>
    %cst_77 = arith.constant 1.000000e+00 : f32
    %447 = vector.broadcast %cst_77 : f32 to vector<2x128xf32>
    %448 = arith.addf %447, %446 : vector<2x128xf32>
    %449 = arith.divf %447, %448 : vector<2x128xf32>
    %450 = math.tanh %444 : vector<2x128xf32>
    %451 = vector.extract_strided_slice %449 {offsets = [0, 0], sizes = [2, 32], strides = [1, 1]} : vector<2x128xf32> to vector<2x32xf32>
    %452 = vector.extract_strided_slice %449 {offsets = [0, 32], sizes = [2, 32], strides = [1, 1]} : vector<2x128xf32> to vector<2x32xf32>
    %453 = vector.extract_strided_slice %450 {offsets = [0, 64], sizes = [2, 32], strides = [1, 1]} : vector<2x128xf32> to vector<2x32xf32>
    %454 = vector.extract_strided_slice %449 {offsets = [0, 96], sizes = [2, 32], strides = [1, 1]} : vector<2x128xf32> to vector<2x32xf32>
    %455 = arith.mulf %452, %410 : vector<2x32xf32>
    %456 = arith.mulf %451, %453 : vector<2x32xf32>
    %457 = arith.addf %455, %456 : vector<2x32xf32>
    %458 = math.tanh %457 : vector<2x32xf32>
    %459 = arith.mulf %454, %458 : vector<2x32xf32>
    %cst_78 = arith.constant -1.000000e+00 : f32
    %460 = vector.shape_cast %417 : vector<2x1xi1> to vector<2x1xi1>
    %461 = vector.broadcast %460 : vector<2x1xi1> to vector<2x32xi1>
    %462 = vector.broadcast %cst_78 : f32 to vector<2x32xf32>
    %463 = arith.select %461, %459, %462 : vector<2x32xi1>, vector<2x32xf32>
    %c14_79 = arith.constant 14 : index
    %c0_80 = arith.constant 0 : index
    %464 = vector.load %arg11[%c14_79, %c0_80] : memref<16x32xf32, #tpu.memory_space<vmem>>, vector<2x32xf32>
    tpu.vector_store %arg11[%c14_79, %c0_80], %463 {strides = array<i32>} : memref<16x32xf32, #tpu.memory_space<vmem>>, vector<2x32xf32>,
    %c0_81 = arith.constant 0 : index
    %c0_82 = arith.constant 0 : index
    %465 = vector.load %arg11[%c0_81, %c0_82] : memref<16x32xf32, #tpu.memory_space<vmem>>, vector<16x32xf32>
    %c0_83 = arith.constant 0 : index
    %c0_84 = arith.constant 0 : index
    %466 = vector.load %arg7[%c0_83, %c0_84] : memref<32x16xf32, #tpu.memory_space<vmem>>, vector<32x16xf32>
    %cst_85 = arith.constant dense<0.000000e+00> : vector<16x16xf32>
    %467 = tpu.matmul %465, %466, %cst_85 {dimension_numbers = #tpu.dot_dimension_numbers<[1], [0], [0], [1], [0, 0, 1, 1], [], []>} : vector<16x32xf32>, vector<32x16xf32>, vector<16x16xf32> -> vector<16x16xf32>
    %c0_86 = arith.constant 0 : index
    %c0_87 = arith.constant 0 : index
    %468 = vector.load %arg8[%c0_86, %c0_87] : memref<1x16xf32, #tpu.memory_space<vmem>>, vector<1x16xf32>
    %469 = vector.broadcast %468 : vector<1x16xf32> to vector<16x16xf32>
    %470 = arith.addf %467, %469 : vector<16x16xf32>
    %c0_88 = arith.constant 0 : index
    %c0_89 = arith.constant 0 : index
    %471 = vector.load %arg9[%c0_88, %c0_89] : memref<16x16xf32, #tpu.memory_space<vmem>>, vector<16x16xf32>
    tpu.vector_store %arg9[%c0_88, %c0_89], %470 {strides = array<i32>} : memref<16x16xf32, #tpu.memory_space<vmem>>, vector<16x16xf32>,
    return
  }
}

</mosaic_0001>

<bundles_post_ra>
// kernel: tpu_custom_call.1
= control target key start
LH: loop header
LB: loop body
LE: loop exit
PB: predicated region body
PF: predicated region fallthrough
CT: control target
= control target key end

     0   :  { %14 = vsyncpa [#allocation5], 0  ;;  %s2251_s0 = inlined_call_operand.vmem [shape: f32[16,4], index: 0, kind: input, shape index: {}]   ;;  %s2252_s1 = inlined_call_operand.vmem [shape: s32[2,1], index: 1, kind: input, shape index: {}]   ;;  %s2253_s2 = inlined_call_operand.vmem [shape: f32[4,128], index: 2, kind: input, shape index: {}]   ;;  %s2254_s3 = inlined_call_operand.vmem [shape: f32[32,128], index: 3, kind: input, shape index: {}]   ;;  %s2255_s4 = inlined_call_operand.vmem [shape: f32[1,128], index: 4, kind: input, shape index: {}]   ;;  %s2256_s5 = inlined_call_operand.hbm [shape: f32[64,128], index: 5, kind: input, shape index: {}]   ;;  %s2257_s6 = inlined_call_operand.vmem [shape: f32[1,128], index: 6, kind: input, shape index: {}]   ;;  %s2258_s7 = inlined_call_operand.vmem [shape: f32[32,16], index: 7, kind: input, shape index: {}]   ;;  %s2259_s8 = inlined_call_operand.vmem [shape: f32[1,16], index: 8, kind: input, shape index: {}]   ;;  %s2260_s9 = inlined_call_operand.hbm [shape: f32[16,16], index: 9, kind: output, shape index: {}]  }
   0x1   :  { %15 = vsyncpa [#allocation6], 0  ;;  %s30_s11 = sshll.u32 %s2256_s5, 4  ;;  %s1576_s12 = smov [#allocation4]   ;;  %s31_s11 = int_to_ptr.hbm [resolvable:$true] %s30_s11 }
   0x2   :  { %s32_s13 = sshll.u32 %s1576_s12, 4  ;;  %s1577_s14 = smov 128   ;;  %s33_s13 = int_to_ptr.vmem [resolvable:$true] %s32_s13 }
   0x3   :  { %s1578_s15 = smov 8  }
   0x4   :  { %38 = dma.hbm_to_vmem [thread:$0]  %s31_s11, 1024, %s33_s13, [#allocation5], %s1577_s14, %s1577_s14, %s1578_s15  }
   0x5   :  { %1572 = dma.done.wait [#allocation5], 1024  }
   0x6   :  { %1573 = vsyncadd [#allocation5], 4294966272  ;;  %vm59_vm0 = vcmask 1043456   ;;  %vm52_vm1 = vcmask 31744   ;;  %v51_v0 = vld [vmem:[%s2253_s2] sm:$0xf] }
   0x7   :  { %v49_v1 = vld [vmem:[%s2251_s0] sm:$0xff]  ;;  %v1649_v2 = vld [vmem:[%s2254_s3 + $0x18] sm:$0xff]  ;;  %1343 = vmatpush.msk.msra.mxu0 %vm59_vm0, %v51_v0  ;;  %v1655_v3 = vld [vmem:[%s2254_s3 + $0x10] sm:$0xff]  ;;  %v1579_v6 = vmov 0.0   ;;  %s1580_s27 = smov 64   ;;  %s1581_s28 = smov 32  }
   0x8   :  { %121 = vmatpush.msra.mxu1 %v1649_v2  ;;  %v1660_v4 = vld [vmem:[%s2254_s3 + $0x8] sm:$0xff]  ;;  %1344 = vmatmul.msk.f32.vlgmr.msra.gmra.mxu0 %vm52_vm1, %v49_v1  ;;  %v1668_v5 = vld [vmem:[%s2254_s3] sm:$0xff]  ;;  %v1582_v29 = vmov 0   ;;  %v1705_v36 = vld [vmem:[#allocation4 + $0x38] sm:$0xff]  ;;  %vm105_vm8 = vcmask 261120   ;;  %vm186_vm9 = vcmask 523264  }
   0x9   :  { %272 = vmatpush.msra.mxu3 %v1649_v2  ;;  %v1686_v9 = vld [vmem:[%s2255_s4] ss:$0 sm:$0xff]  ;;  %1387 = vset.pattern.permute.xlu1 %v1582_v29  ;;  %v1707_v37 = vld [vmem:[#allocation4 + $0x30] sm:$0xff]  ;;  %v1711_v38 = vld [vmem:[#allocation4 + $0x28] sm:$0xff]  ;;  %s1583_s25 = smov [#allocation7]  }
   0xa   :  { %122 = vmatpush.msra.mxu1 %v1655_v3  ;;  %1388 = vset.pattern.permute.xlu2 %v1582_v29  ;;  %v1700_v34 = vld [vmem:[%s2252_s1] sm:$0x3]  ;;  %v1721_v40 = vld [vmem:[#allocation4 + $0x18] sm:$0xff]  ;;  %v1726_v41 = vld [vmem:[#allocation4 + $0x10] sm:$0xff]  ;;  %s1328_s3 = sshll.u32 %s1583_s25, 4  ;;  %s1329_s3 = int_to_ptr.vmem [resolvable:$true] %s1328_s3 }
   0xb   :  { %273 = vmatpush.msra.mxu3 %v1655_v3  ;;  %1389 = vset.pattern.permute.xlu0 %v1582_v29  ;;  %vm103_vm6 = vcmp.gt.s32.totalorder %v1700_v34, 0  ;;  %v1716_v39 = vld [vmem:[#allocation4 + $0x20] sm:$0xff]  ;;  %v1731_v42 = vld [vmem:[#allocation4 + $0x8] sm:$0xff]  ;;  %vm256_vm14 = vcmp.gt.s32.totalorder %v1700_v34, 1 }
   0xc   :  { %123 = vmatpush.msra.mxu1 %v1660_v4  ;;  %v171_v35 = vsel %vm103_vm6, 1, %v1582_v29  ;;  %198 = vmatpush.msra.mxu2 %v1705_v36  ;;  %v1749_v47 = vld [vmem:[#allocation4] sm:$0xff] }
   0xd   :  { %274 = vmatpush.msra.mxu3 %v1660_v4  ;;  %346 = vmatpush.msrb.mxu0 %v1705_v36  ;;  %v1784_v50 = vld [vmem:[%s2257_s6] ss:$0 sm:$0xff] }
   0xe   :  { %124 = vmatpush.msra.mxu1 %v1668_v5  ;;  %199 = vmatpush.msra.mxu2 %v1707_v37 }
   0xf   :  { %125 = vmatmul.f32.vlgmr.msra.gmra.mxu1 %v1579_v6  ;;  %275 = vmatpush.msra.mxu3 %v1668_v5 }
  0x10   :  { %419 = vmatpush.msrb.mxu1 %v1649_v2  ;;  %347 = vmatpush.msrb.mxu0 %v1707_v37 }
  0x11   :  { %493 = vmatpush.msrb.mxu3 %v1705_v36  ;;  %200 = vmatpush.msra.mxu2 %v1711_v38 }
  0x12   :  { %420 = vmatpush.msrb.mxu1 %v1655_v3  ;;  %348 = vmatpush.msrb.mxu0 %v1711_v38 }
  0x13   :  { %494 = vmatpush.msrb.mxu3 %v1707_v37  ;;  %201 = vmatpush.msra.mxu2 %v1716_v39 }
  0x14   :  { %421 = vmatpush.msrb.mxu1 %v1660_v4  ;;  %349 = vmatpush.msrb.mxu0 %v1716_v39 }
  0x15   :  { %495 = vmatpush.msrb.mxu3 %v1711_v38  ;;  %202 = vmatpush.msra.mxu2 %v1721_v40 }
  0x16   :  { %422 = vmatpush.msrb.mxu1 %v1668_v5  ;;  %350 = vmatpush.msrb.mxu0 %v1721_v40 }
  0x17   :  { %496 = vmatpush.msrb.mxu3 %v1716_v39  ;;  %203 = vmatpush.msra.mxu2 %v1726_v41 }
  0x18   :  { %566 = vmatpush.msra.mxu1 %v1649_v2  ;;  %351 = vmatpush.msrb.mxu0 %v1726_v41 }
  0x19   :  { %497 = vmatpush.msrb.mxu3 %v1721_v40  ;;  %204 = vmatpush.msra.mxu2 %v1731_v42 }
  0x1a   :  { %567 = vmatpush.msra.mxu1 %v1655_v3  ;;  %352 = vmatpush.msrb.mxu0 %v1731_v42 }
  0x1b   :  { %498 = vmatpush.msrb.mxu3 %v1726_v41  ;;  %205 = vmatpush.msra.mxu2 %v1749_v47 }
  0x1c   :  { %568 = vmatpush.msra.mxu1 %v1660_v4  ;;  %353 = vmatpush.msrb.mxu0 %v1749_v47 }
  0x1d   :  { %499 = vmatpush.msrb.mxu3 %v1731_v42  ;;  %640 = vmatpush.msrb.mxu2 %v1705_v36 }
  0x1e   :  { %569 = vmatpush.msra.mxu1 %v1668_v5  ;;  %934 = vmatpush.msra.mxu0 %v1705_v36 }
  0x1f   :  { %500 = vmatpush.msrb.mxu3 %v1749_v47  ;;  %641 = vmatpush.msrb.mxu2 %v1707_v37 }
  0x20   :  { %935 = vmatpush.msra.mxu0 %v1707_v37 }
  0x21   :  { %642 = vmatpush.msrb.mxu2 %v1711_v38 }
  0x22   :  { %936 = vmatpush.msra.mxu0 %v1711_v38 }
  0x23   :  { %643 = vmatpush.msrb.mxu2 %v1716_v39 }
  0x24   :  { %937 = vmatpush.msra.mxu0 %v1716_v39 }
  0x25   :  { %644 = vmatpush.msrb.mxu2 %v1721_v40 }
  0x26   :  { %938 = vmatpush.msra.mxu0 %v1721_v40 }
  0x27   :  { %645 = vmatpush.msrb.mxu2 %v1726_v41 }
  0x28   :  { %939 = vmatpush.msra.mxu0 %v1726_v41 }
  0x29   :  { %646 = vmatpush.msrb.mxu2 %v1731_v42 }
  0x2a   :  { %940 = vmatpush.msra.mxu0 %v1731_v42 }
  0x2b   :  { %647 = vmatpush.msrb.mxu2 %v1749_v47 }
  0x2c   :  { %941 = vmatpush.msra.mxu0 %v1749_v47 }
  0x85   :  { %v80_v7 = vpop.f32.mrf.mxu0 }
  0x86   :  { %86 = vst [vmem:[#allocation2] sm:$0xff] %v80_v7 }
  0x8c   :  { %v126_v8 = vpop.f32.mrf.mxu1 }
  0x8d   :  { %v104_v10 = vld [vmem:[#allocation2] sm:$0x3]  ;;  %v257_v51 = vld [vmem:[#allocation2 + $0x2] sm:$0x3] }
  0x8e   :  { %v129_v11 = vadd.f32 %v126_v8, %v104_v10 }
  0x90   :  { %v133_v12 = vadd.f32 %v1686_v9, %v129_v11 }
  0x92   :  { %1393 = vtanh.f32 %v133_v12  ;;  %v1346_v14 = vmul.f32 -1.442695, %v133_v12 }
  0x94   :  { %1395 = vpow2.f32 %v1346_v14 }
  0x98   :  { %v1394_v13 = vpop.eup %1393 }
  0x99   :  { %156 = vrot.lane.b32.xlu0 %v1394_v13, %s1580_s27 }
  0x9a   :  { %v1396_v15 = vpop.eup %1395 }
  0x9b   :  { %v137_v16 = vadd.f32 1.0, %v1396_v15 }
  0x9d   :  { %1397 = vrcp.f32 %v137_v16  ;;  %v149_v22 = vand.u32 2147483648, %v137_v16  ;;  %vm143_vm3 = vweird.f32 %v137_v16  ;;  %v147_v23 = vand.u32 2147483647, %v137_v16 }
  0x9f   :  { %v150_v25 = vor.u32 1.1754944e-38, %v149_v22  ;;  %vm148_vm5 = vcmp.eq.f32.partialorder %v147_v23, 8.507059e+37 }
  0xa3   :  { %v1398_v17 = vpop.eup %1397 }
  0xa4   :  { %v139_v18 = vmul.f32 %v1398_v17, %v137_v16  ;;  %vm144_vm2 = vweird.f32 %v1398_v17 }
  0xa5   :  { %vm145_vm4 = vmor %vm143_vm3, %vm144_vm2 }
  0xa6   :  { %v140_v19 = vsub.f32 1.0, %v139_v18 }
  0xa8   :  { %v141_v20 = vmul.f32 %v1398_v17, %v140_v19 }
  0xaa   :  { %v142_v21 = vadd.f32 %v1398_v17, %v141_v20  ;;  %v319_v20 = vsel %vm256_vm14, 1, %v1582_v29 }
  0xac   :  { %v146_v24 = vsel %vm145_vm4, %v1398_v17, %v142_v21 }
  0xad   :  { %v151_v27 = vsel %vm148_vm5, %v150_v25, %v146_v24 }
  0xae   :  { %v154_v30 = vmul.f32 0.0, %v151_v27 }
 0x10b   :  { %v157_v26 = vpop.permute.xlu0 %156 }
 0x10c   :  { %v159_v28 = vmul.f32 %v157_v26, %v151_v27 }
 0x10e   :  { %161 = vrot.lane.b32.xlu0 %v159_v28, %s1581_s28 }
 0x180   :  { %v162_v31 = vpop.permute.xlu0 %161 }
 0x181   :  { %v1694_v32 = vadd.f32 %v162_v31, %v154_v30 }
 0x183   :  { %1399 = vtanh.f32 %v1694_v32 }
 0x189   :  { %v1400_v33 = vpop.eup %1399 }
 0x18a   :  { %167 = vrot.lane.b32.xlu1 %v1400_v33, %s1580_s27 }
 0x192   :  { %173 = vperm.xlu1 %1387, %v171_v35  }
 0x1fc   :  { %v168_v43 = vpop.permute.xlu1 %167 }
 0x1fd   :  { %v170_v44 = vmul.f32 %v168_v43, %v151_v27 }
 0x204   :  { %v1740_v45 = vpop.permute.xlu1 %173 }
 0x205   :  { %vm175_vm7 = vcmp.eq.s32.totalorder %v1740_v45, 1 }
 0x206   :  { %v1745_v46 = vsel %vm175_vm7, %v170_v44, 0.0  ;;  %v1797_v35 = vsel %vm175_vm7, %v1694_v32, 0.0 }
 0x207   :  { %179 = vrot.lane.b32.xlu2 %v1745_v46, %s1581_s28 }
 0x261   :  { %v180_v48 = vpop.permute.xlu2 %179 }
 0x262   :  { %1349 = vmatmul.msk.f32.vlgmr.msra.gmra.mxu3 %vm105_vm8, %v180_v48  ;;  %v182_v49 = vsel %vm105_vm8, %v180_v48, 0.0 }
 0x263   :  { %1347 = vmatmul.msk.f32.vlgmr.msra.gmra.mxu2 %vm186_vm9, %v182_v49  ;;  %860 = vmatpush.msra.mxu3 %v1649_v2 }
 0x264   :  { %1007 = vmatpush.msra.mxu2 %v1649_v2 }
 0x265   :  { %861 = vmatpush.msra.mxu3 %v1655_v3 }
 0x266   :  { %1008 = vmatpush.msra.mxu2 %v1655_v3 }
 0x267   :  { %862 = vmatpush.msra.mxu3 %v1660_v4 }
 0x268   :  { %1009 = vmatpush.msra.mxu2 %v1660_v4 }
 0x269   :  { %863 = vmatpush.msra.mxu3 %v1668_v5 }
 0x26a   :  { %1010 = vmatpush.msra.mxu2 %v1668_v5 }
 0x2e5   :  { %v277_v52 = vpop.f32.mrf.mxu3 }
 0x2e6   :  { %v280_v53 = vadd.f32 %v277_v52, %v257_v51  ;;  %v207_v54 = vpop.f32.mrf.mxu2 }
 0x2e7   :  { %v208_v55 = vadd.f32 %v1784_v50, %v207_v54 }
 0x2e8   :  { %v281_v56 = vadd.f32 %v1686_v9, %v280_v53 }
 0x2e9   :  { %1401 = vtanh.f32 %v208_v55  ;;  %v1348_v63 = vmul.f32 -1.442695, %v208_v55 }
 0x2ea   :  { %1403 = vtanh.f32 %v281_v56  ;;  %v1350_v59 = vmul.f32 -1.442695, %v281_v56 }
 0x2ec   :  { %1405 = vpow2.f32 %v1350_v59 }
 0x2ef   :  { %v1402_v57 = vpop.eup %1401 }
 0x2f0   :  { %v1404_v58 = vpop.eup %1403  ;;  %232 = vrot.lane.b32.xlu0 %v1402_v57, %s1580_s27 }
 0x2f1   :  { %304 = vrot.lane.b32.xlu2 %v1404_v58, %s1580_s27 }
 0x2f2   :  { %v1406_v60 = vpop.eup %1405 }
 0x2f3   :  { %v285_v61 = vadd.f32 1.0, %v1406_v60  ;;  %v50_v60 = vld [vmem:[%s2251_s0 + $0x8] sm:$0xff] }
 0x2f4   :  { %1345 = vmatmul.msk.f32.gmra.mxu0 %vm52_vm1, %v50_v60 }
 0x2f5   :  { %1407 = vrcp.f32 %v285_v61  ;;  %v297_v11 = vand.u32 2147483648, %v285_v61  ;;  %vm291_vm11 = vweird.f32 %v285_v61  ;;  %v295_v12 = vand.u32 2147483647, %v285_v61 }
 0x2f6   :  { %1409 = vpow2.f32 %v1348_v63 }
 0x2f7   :  { %v298_v14 = vor.u32 1.1754944e-38, %v297_v11  ;;  %vm296_vm13 = vcmp.eq.f32.partialorder %v295_v12, 8.507059e+37 }
 0x2fb   :  { %v1408_v62 = vpop.eup %1407 }
 0x2fc   :  { %v287_v0 = vmul.f32 %v1408_v62, %v285_v61  ;;  %v1410_v6 = vpop.eup %1409  ;;  %vm292_vm10 = vweird.f32 %v1408_v62 }
 0x2fd   :  { %v213_v8 = vadd.f32 1.0, %v1410_v6  ;;  %vm293_vm12 = vmor %vm291_vm11, %vm292_vm10  ;;  %vm403_vm11 = vcmp.gt.s32.totalorder %v1700_v34, 2 }
 0x2fe   :  { %v288_v1 = vsub.f32 1.0, %v287_v0  ;;  %v404_v0 = vld [vmem:[#allocation2 + $0x4] sm:$0x3] }
 0x2ff   :  { %1411 = vrcp.f32 %v213_v8  ;;  %v225_v24 = vand.u32 2147483648, %v213_v8  ;;  %vm219_vm0 = vweird.f32 %v213_v8  ;;  %v223_v25 = vand.u32 2147483647, %v213_v8 }
 0x300   :  { %v289_v7 = vmul.f32 %v1408_v62, %v288_v1 }
 0x301   :  { %v226_v27 = vor.u32 1.1754944e-38, %v225_v24  ;;  %vm224_vm3 = vcmp.eq.f32.partialorder %v223_v25, 8.507059e+37 }
 0x302   :  { %v290_v10 = vadd.f32 %v1408_v62, %v289_v7 }
 0x304   :  { %v294_v13 = vsel %vm293_vm12, %v1408_v62, %v290_v10 }
 0x305   :  { %v299_v16 = vsel %vm296_vm13, %v298_v14, %v294_v13  ;;  %v1412_v17 = vpop.eup %1411 }
 0x306   :  { %v215_v19 = vmul.f32 %v1412_v17, %v213_v8  ;;  %vm220_vm15 = vweird.f32 %v1412_v17  ;;  %v302_v44 = vmul.f32 %v299_v16, %v1797_v35 }
 0x307   :  { %vm221_vm2 = vmor %vm219_vm0, %vm220_vm15 }
 0x308   :  { %v216_v21 = vsub.f32 1.0, %v215_v19 }
 0x30a   :  { %v217_v22 = vmul.f32 %v1412_v17, %v216_v21 }
 0x30c   :  { %v218_v23 = vadd.f32 %v1412_v17, %v217_v22 }
 0x30e   :  { %v222_v26 = vsel %vm221_vm2, %v1412_v17, %v218_v23 }
 0x30f   :  { %v227_v30 = vsel %vm224_vm3, %v226_v27, %v222_v26 }
 0x310   :  { %v230_v33 = vmul.f32 0.0, %v227_v30 }
 0x34b   :  { %v305_v15 = vpop.permute.xlu2 %304 }
 0x34c   :  { %v307_v18 = vmul.f32 %v305_v15, %v299_v16 }
 0x34e   :  { %309 = vrot.lane.b32.xlu1 %v307_v18, %s1581_s28 }
 0x356   :  { %321 = vperm.xlu1 %1387, %v319_v20  }
 0x362   :  { %v233_v28 = vpop.permute.xlu0 %232 }
 0x363   :  { %v235_v31 = vmul.f32 %v233_v28, %v227_v30 }
 0x365   :  { %237 = vrot.lane.b32.xlu2 %v235_v31, %s1581_s28 }
 0x3bf   :  { %v238_v43 = vpop.permute.xlu2 %237 }
 0x3c0   :  { %v1800_v48 = vadd.f32 %v238_v43, %v230_v33  ;;  %v310_v49 = vpop.permute.xlu1 %309 }
 0x3c1   :  { %v1802_v51 = vadd.f32 %v310_v49, %v302_v44  ;;  %v466_v44 = vsel %vm403_vm11, 1, %v1582_v29 }
 0x3c2   :  { %1413 = vtanh.f32 %v1800_v48 }
 0x3c3   :  { %1415 = vtanh.f32 %v1802_v51 }
 0x3c8   :  { %v1414_v52 = vpop.eup %1413  ;;  %v1817_v56 = vpop.permute.xlu1 %321 }
 0x3c9   :  { %v1416_v53 = vpop.eup %1415  ;;  %243 = vrot.lane.b32.xlu2 %v1414_v52, %s1580_s27  ;;  %vm323_vm4 = vcmp.eq.s32.totalorder %v1817_v56, 1 }
 0x3ca   :  { %315 = vrot.lane.b32.xlu0 %v1416_v53, %s1580_s27 }
 0x423   :  { %v244_v32 = vpop.permute.xlu2 %243 }
 0x424   :  { %v1808_v54 = vmul.f32 %v244_v32, %v227_v30 }
 0x426   :  { %v1813_v55 = vsel %vm175_vm7, %v1808_v54, 0.0 }
 0x427   :  { %331 = vrot.lane.b32.xlu1 %v1813_v55, %s1580_s27 }
 0x43c   :  { %v316_v57 = vpop.permute.xlu0 %315 }
 0x43d   :  { %v318_v58 = vmul.f32 %v316_v57, %v299_v16 }
 0x43f   :  { %v1823_v59 = vsel %vm323_vm4, %v318_v58, %v1745_v46  ;;  %v83_v46 = vpop.f32.mrf.mxu0 }
 0x440   :  { %327 = vrot.lane.b32.xlu0 %v1823_v59, %s1581_s28  ;;  %87 = vst [vmem:[#allocation2 + $0x8] sm:$0xff] %v83_v46  ;;  %v1849_v46 = vsel %vm175_vm7, %v1800_v48, 0.0 }
 0x499   :  { %v332_v61 = vpop.permute.xlu1 %331 }
 0x4b2   :  { %v328_v62 = vpop.permute.xlu0 %327 }
 0x4b3   :  { %v334_v63 = vsel %vm105_vm8, %v328_v62, %v332_v61  ;;  %1353 = vmatmul.msk.f32.vlgmr.msrb.gmra.mxu1 %vm105_vm8, %v328_v62 }
 0x4b4   :  { %1351 = vmatmul.msk.f32.vlgmr.msrb.gmra.mxu0 %vm186_vm9, %v334_v63  ;;  %713 = vmatpush.msrb.mxu1 %v1649_v2 }
 0x4b6   :  { %714 = vmatpush.msrb.mxu1 %v1655_v3 }
 0x4b8   :  { %715 = vmatpush.msrb.mxu1 %v1660_v4 }
 0x4ba   :  { %716 = vmatpush.msrb.mxu1 %v1668_v5 }
 0x530   :  { %v424_v1 = vpop.f32.mrf.mxu1 }
 0x531   :  { %v427_v6 = vadd.f32 %v424_v1, %v404_v0  ;;  %v355_v7 = vpop.f32.mrf.mxu0  ;;  %v1856_v1 = vsel %vm323_vm4, %v1802_v51, %v1797_v35 }
 0x532   :  { %v356_v8 = vadd.f32 %v1784_v50, %v355_v7 }
 0x533   :  { %v428_v10 = vadd.f32 %v1686_v9, %v427_v6 }
 0x534   :  { %1417 = vtanh.f32 %v356_v8  ;;  %v1352_v17 = vmul.f32 -1.442695, %v356_v8 }
 0x535   :  { %1419 = vtanh.f32 %v428_v10  ;;  %v1354_v13 = vmul.f32 -1.442695, %v428_v10 }
 0x537   :  { %1421 = vpow2.f32 %v1354_v13 }
 0x53a   :  { %v1418_v11 = vpop.eup %1417 }
 0x53b   :  { %v1420_v12 = vpop.eup %1419  ;;  %380 = vrot.lane.b32.xlu0 %v1418_v11, %s1580_s27 }
 0x53c   :  { %451 = vrot.lane.b32.xlu2 %v1420_v12, %s1580_s27 }
 0x53d   :  { %v1422_v14 = vpop.eup %1421 }
 0x53e   :  { %v432_v15 = vadd.f32 1.0, %v1422_v14 }
 0x540   :  { %1423 = vrcp.f32 %v432_v15  ;;  %v444_v24 = vand.u32 2147483648, %v432_v15  ;;  %vm438_vm5 = vweird.f32 %v432_v15  ;;  %v442_v25 = vand.u32 2147483647, %v432_v15 }
 0x541   :  { %1425 = vpow2.f32 %v1352_v17 }
 0x542   :  { %v445_v27 = vor.u32 1.1754944e-38, %v444_v24  ;;  %vm443_vm10 = vcmp.eq.f32.partialorder %v442_v25, 8.507059e+37 }
 0x546   :  { %v1424_v16 = vpop.eup %1423 }
 0x547   :  { %v434_v18 = vmul.f32 %v1424_v16, %v432_v15  ;;  %v1426_v20 = vpop.eup %1425  ;;  %vm439_vm1 = vweird.f32 %v1424_v16 }
 0x548   :  { %v361_v22 = vadd.f32 1.0, %v1426_v20  ;;  %vm440_vm6 = vmor %vm438_vm5, %vm439_vm1 }
 0x549   :  { %v435_v19 = vsub.f32 1.0, %v434_v18 }
 0x54a   :  { %1427 = vrcp.f32 %v361_v22  ;;  %v373_v32 = vand.u32 2147483648, %v361_v22  ;;  %vm367_vm13 = vweird.f32 %v361_v22  ;;  %v371_v57 = vand.u32 2147483647, %v361_v22 }
 0x54b   :  { %v436_v21 = vmul.f32 %v1424_v16, %v435_v19 }
 0x54c   :  { %v374_v60 = vor.u32 1.1754944e-38, %v373_v32  ;;  %vm372_vm15 = vcmp.eq.f32.partialorder %v371_v57, 8.507059e+37 }
 0x54d   :  { %v437_v23 = vadd.f32 %v1424_v16, %v436_v21 }
 0x54f   :  { %v441_v26 = vsel %vm440_vm6, %v1424_v16, %v437_v23  ;;  %vm550_vm6 = vcmp.gt.s32.totalorder %v1700_v34, 3 }
 0x550   :  { %v446_v28 = vsel %vm443_vm10, %v445_v27, %v441_v26  ;;  %v1428_v31 = vpop.eup %1427 }
 0x551   :  { %v363_v43 = vmul.f32 %v1428_v31, %v361_v22  ;;  %vm368_vm12 = vweird.f32 %v1428_v31  ;;  %v449_v7 = vmul.f32 %v446_v28, %v1856_v1 }
 0x552   :  { %vm369_vm14 = vmor %vm367_vm13, %vm368_vm12 }
 0x553   :  { %v364_v49 = vsub.f32 1.0, %v363_v43 }
 0x555   :  { %v365_v52 = vmul.f32 %v1428_v31, %v364_v49 }
 0x557   :  { %v366_v53 = vadd.f32 %v1428_v31, %v365_v52 }
 0x559   :  { %v370_v58 = vsel %vm369_vm14, %v1428_v31, %v366_v53 }
 0x55a   :  { %v375_v62 = vsel %vm372_vm15, %v374_v60, %v370_v58 }
 0x55b   :  { %v378_v0 = vmul.f32 %v375_v62, %v1849_v46 }
 0x596   :  { %v452_v30 = vpop.permute.xlu2 %451 }
 0x597   :  { %v454_v33 = vmul.f32 %v452_v30, %v446_v28 }
 0x599   :  { %456 = vrot.lane.b32.xlu1 %v454_v33, %s1581_s28 }
 0x5a1   :  { %468 = vperm.xlu1 %1387, %v466_v44  }
 0x5ad   :  { %v381_v61 = vpop.permute.xlu0 %380 }
 0x5ae   :  { %v383_v63 = vmul.f32 %v381_v61, %v375_v62 }
 0x5b0   :  { %385 = vrot.lane.b32.xlu2 %v383_v63, %s1581_s28 }
 0x60a   :  { %v386_v6 = vpop.permute.xlu2 %385 }
 0x60b   :  { %v1859_v8 = vadd.f32 %v386_v6, %v378_v0  ;;  %v457_v10 = vpop.permute.xlu1 %456 }
 0x60c   :  { %v1861_v11 = vadd.f32 %v457_v10, %v449_v7  ;;  %v613_v7 = vsel %vm550_vm6, 1, %v1582_v29 }
 0x60d   :  { %1429 = vtanh.f32 %v1859_v8 }
 0x60e   :  { %1431 = vtanh.f32 %v1861_v11 }
 0x613   :  { %v1430_v48 = vpop.eup %1429  ;;  %v1877_v14 = vpop.permute.xlu1 %468 }
 0x614   :  { %v1432_v12 = vpop.eup %1431  ;;  %391 = vrot.lane.b32.xlu2 %v1430_v48, %s1580_s27  ;;  %vm470_vm0 = vcmp.eq.s32.totalorder %v1877_v14, 1  ;;  %v1285_v14 = vld [vmem:[%s2258_s7 + $0x8] sm:$0xff] }
 0x615   :  { %462 = vrot.lane.b32.xlu0 %v1432_v12, %s1580_s27 }
 0x66e   :  { %v392_v35 = vpop.permute.xlu2 %391 }
 0x66f   :  { %v1867_v51 = vmul.f32 %v392_v35, %v375_v62 }
 0x671   :  { %v1873_v13 = vsel %vm323_vm4, %v1867_v51, %v1813_v55 }
 0x672   :  { %478 = vrot.lane.b32.xlu1 %v1873_v13, %s1580_s27 }
 0x687   :  { %v463_v15 = vpop.permute.xlu0 %462 }
 0x688   :  { %v465_v16 = vmul.f32 %v463_v15, %v446_v28 }
 0x68a   :  { %v1883_v17 = vsel %vm470_vm0, %v465_v16, %v1823_v59  ;;  %v551_v59 = vld [vmem:[#allocation2 + $0x6] sm:$0x3] }
 0x68b   :  { %474 = vrot.lane.b32.xlu0 %v1883_v17, %s1581_s28 }
 0x6e4   :  { %v479_v18 = vpop.permute.xlu1 %478 }
 0x6fd   :  { %v475_v55 = vpop.permute.xlu0 %474 }
 0x6fe   :  { %v481_v19 = vsel %vm105_vm8, %v475_v55, %v479_v18  ;;  %1357 = vmatmul.msk.f32.vlgmr.msra.gmra.mxu1 %vm105_vm8, %v475_v55 }
 0x6ff   :  { %1355 = vmatmul.msk.f32.vlgmr.msrb.gmra.mxu3 %vm186_vm9, %v481_v19  ;;  %787 = vmatpush.msra.mxu1 %v1705_v36 }
 0x700   :  { %1081 = vmatpush.msrb.mxu3 %v1705_v36 }
 0x701   :  { %788 = vmatpush.msra.mxu1 %v1707_v37 }
 0x702   :  { %1082 = vmatpush.msrb.mxu3 %v1707_v37 }
 0x703   :  { %789 = vmatpush.msra.mxu1 %v1711_v38 }
 0x704   :  { %1083 = vmatpush.msrb.mxu3 %v1711_v38 }
 0x705   :  { %790 = vmatpush.msra.mxu1 %v1716_v39 }
 0x706   :  { %1084 = vmatpush.msrb.mxu3 %v1716_v39 }
 0x707   :  { %791 = vmatpush.msra.mxu1 %v1721_v40 }
 0x708   :  { %1085 = vmatpush.msrb.mxu3 %v1721_v40 }
 0x709   :  { %792 = vmatpush.msra.mxu1 %v1726_v41 }
 0x70a   :  { %1086 = vmatpush.msrb.mxu3 %v1726_v41 }
 0x70b   :  { %793 = vmatpush.msra.mxu1 %v1731_v42 }
 0x70c   :  { %1087 = vmatpush.msrb.mxu3 %v1731_v42 }
 0x70d   :  { %794 = vmatpush.msra.mxu1 %v1749_v47 }
 0x70e   :  { %1088 = vmatpush.msrb.mxu3 %v1749_v47 }
 0x77b   :  { %v571_v20 = vpop.f32.mrf.mxu1 }
 0x77c   :  { %v574_v21 = vadd.f32 %v571_v20, %v551_v59 }
 0x77e   :  { %v575_v22 = vadd.f32 %v1686_v9, %v574_v21  ;;  %v1918_v21 = vsel %vm470_vm0, %v1861_v11, %v1856_v1 }
 0x780   :  { %1433 = vtanh.f32 %v575_v22  ;;  %v1358_v27 = vmul.f32 -1.442695, %v575_v22 }
 0x782   :  { %v502_v23 = vpop.f32.mrf.mxu3 }
 0x783   :  { %v503_v24 = vadd.f32 %v1784_v50, %v502_v23 }
 0x785   :  { %1435 = vtanh.f32 %v503_v24  ;;  %v1356_v43 = vmul.f32 -1.442695, %v503_v24 }
 0x786   :  { %v1434_v25 = vpop.eup %1433  ;;  %1437 = vpow2.f32 %v1358_v27 }
 0x787   :  { %598 = vrot.lane.b32.xlu2 %v1434_v25, %s1580_s27  ;;  %v1928_v25 = vsel %vm323_vm4, %v1859_v8, %v1849_v46 }
 0x78b   :  { %v1436_v26 = vpop.eup %1435 }
 0x78c   :  { %527 = vrot.lane.b32.xlu0 %v1436_v26, %s1580_s27  ;;  %v1438_v28 = vpop.eup %1437 }
 0x78d   :  { %v579_v30 = vadd.f32 1.0, %v1438_v28 }
 0x78f   :  { %1439 = vrcp.f32 %v579_v30  ;;  %v591_v32 = vand.u32 2147483648, %v579_v30  ;;  %vm585_vm3 = vweird.f32 %v579_v30  ;;  %v589_v57 = vand.u32 2147483647, %v579_v30 }
 0x790   :  { %1441 = vpow2.f32 %v1356_v43 }
 0x791   :  { %v592_v61 = vor.u32 1.1754944e-38, %v591_v32  ;;  %vm590_vm5 = vcmp.eq.f32.partialorder %v589_v57, 8.507059e+37 }
 0x795   :  { %v1440_v31 = vpop.eup %1439 }
 0x796   :  { %v581_v33 = vmul.f32 %v1440_v31, %v579_v30  ;;  %vm586_vm2 = vweird.f32 %v1440_v31  ;;  %v1442_v53 = vpop.eup %1441 }
 0x797   :  { %vm587_vm1 = vmor %vm585_vm3, %vm586_vm2  ;;  %v508_v58 = vadd.f32 1.0, %v1442_v53 }
 0x798   :  { %v582_v44 = vsub.f32 1.0, %v581_v33 }
 0x799   :  { %1443 = vrcp.f32 %v508_v58  ;;  %v520_v15 = vand.u32 2147483648, %v508_v58  ;;  %vm514_vm11 = vweird.f32 %v508_v58  ;;  %v518_v16 = vand.u32 2147483647, %v508_v58 }
 0x79a   :  { %v583_v49 = vmul.f32 %v1440_v31, %v582_v44 }
 0x79b   :  { %v521_v55 = vor.u32 1.1754944e-38, %v520_v15  ;;  %vm519_vm13 = vcmp.eq.f32.partialorder %v518_v16, 8.507059e+37 }
 0x79c   :  { %v584_v52 = vadd.f32 %v1440_v31, %v583_v49 }
 0x79e   :  { %v588_v60 = vsel %vm587_vm1, %v1440_v31, %v584_v52 }
 0x79f   :  { %v593_v62 = vsel %vm590_vm5, %v592_v61, %v588_v60  ;;  %v1444_v6 = vpop.eup %1443  ;;  %vm697_vm5 = vcmp.gt.s32.totalorder %v1700_v34, 4 }
 0x7a0   :  { %v510_v10 = vmul.f32 %v1444_v6, %v508_v58  ;;  %vm515_vm10 = vweird.f32 %v1444_v6  ;;  %v596_v22 = vmul.f32 %v593_v62, %v1918_v21 }
 0x7a1   :  { %vm516_vm12 = vmor %vm514_vm11, %vm515_vm10 }
 0x7a2   :  { %v511_v48 = vsub.f32 1.0, %v510_v10 }
 0x7a4   :  { %v512_v12 = vmul.f32 %v1444_v6, %v511_v48 }
 0x7a6   :  { %v513_v35 = vadd.f32 %v1444_v6, %v512_v12 }
 0x7a8   :  { %v517_v18 = vsel %vm516_vm12, %v1444_v6, %v513_v35  ;;  %v760_v35 = vsel %vm697_vm5, 1, %v1582_v29  ;;  %vm844_vm5 = vcmp.gt.s32.totalorder %v1700_v34, 5 }
 0x7a9   :  { %v522_v59 = vsel %vm519_vm13, %v521_v55, %v517_v18 }
 0x7aa   :  { %v525_v26 = vmul.f32 %v522_v59, %v1928_v25 }
 0x7e1   :  { %v599_v63 = vpop.permute.xlu2 %598 }
 0x7e2   :  { %v601_v0 = vmul.f32 %v599_v63, %v593_v62 }
 0x7e4   :  { %603 = vrot.lane.b32.xlu1 %v601_v0, %s1581_s28 }
 0x7ec   :  { %615 = vperm.xlu1 %1387, %v613_v7  }
 0x7fe   :  { %v528_v19 = vpop.permute.xlu0 %527 }
 0x7ff   :  { %v530_v20 = vmul.f32 %v528_v19, %v522_v59 }
 0x801   :  { %532 = vrot.lane.b32.xlu2 %v530_v20, %s1581_s28 }
 0x856   :  { %v604_v23 = vpop.permute.xlu1 %603 }
 0x857   :  { %v1921_v24 = vadd.f32 %v604_v23, %v596_v22 }
 0x859   :  { %1445 = vtanh.f32 %v1921_v24 }
 0x85b   :  { %v533_v27 = vpop.permute.xlu2 %532 }
 0x85c   :  { %v1931_v28 = vadd.f32 %v533_v27, %v525_v26 }
 0x85e   :  { %1447 = vtanh.f32 %v1931_v28  ;;  %v1946_v8 = vpop.permute.xlu1 %615 }
 0x85f   :  { %v1446_v1 = vpop.eup %1445  ;;  %vm617_vm14 = vcmp.eq.s32.totalorder %v1946_v8, 1 }
 0x860   :  { %609 = vrot.lane.b32.xlu0 %v1446_v1, %s1580_s27  ;;  %v1983_v1 = vsel %vm617_vm14, %v1921_v24, %v1918_v21 }
 0x864   :  { %v1448_v11 = vpop.eup %1447 }
 0x865   :  { %538 = vrot.lane.b32.xlu2 %v1448_v11, %s1580_s27 }
 0x8bf   :  { %v539_v30 = vpop.permute.xlu2 %538 }
 0x8c0   :  { %v1936_v31 = vmul.f32 %v539_v30, %v522_v59 }
 0x8c2   :  { %v1942_v46 = vsel %vm470_vm0, %v1936_v31, %v1873_v13 }
 0x8c3   :  { %625 = vrot.lane.b32.xlu1 %v1942_v46, %s1580_s27 }
 0x8d2   :  { %v610_v33 = vpop.permute.xlu0 %609 }
 0x8d3   :  { %v612_v43 = vmul.f32 %v610_v33, %v593_v62 }
 0x8d5   :  { %v1952_v44 = vsel %vm617_vm14, %v612_v43, %v1883_v17  ;;  %v1993_v43 = vsel %vm470_vm0, %v1931_v28, %v1928_v25 }
 0x8d6   :  { %621 = vrot.lane.b32.xlu0 %v1952_v44, %s1581_s28 }
 0x935   :  { %v626_v49 = vpop.permute.xlu1 %625 }
 0x948   :  { %v622_v13 = vpop.permute.xlu0 %621 }
 0x949   :  { %v628_v52 = vsel %vm105_vm8, %v622_v13, %v626_v49  ;;  %1361 = vmatmul.msk.f32.vlgmr.msrb.gmra.mxu1 %vm105_vm8, %v622_v13 }
 0x94a   :  { %1359 = vmatmul.msk.f32.vlgmr.msrb.gmra.mxu2 %vm186_vm9, %v628_v52  ;;  %1154 = vmatpush.msrb.mxu1 %v1649_v2  ;;  %v698_v2 = vld [vmem:[#allocation2 + $0x8] sm:$0x3] }
 0x94b   :  { %1227 = vmatpush.msrb.mxu2 %v1705_v36 }
 0x94c   :  { %1155 = vmatpush.msrb.mxu1 %v1655_v3 }
 0x94d   :  { %1228 = vmatpush.msrb.mxu2 %v1707_v37 }
 0x94e   :  { %1156 = vmatpush.msrb.mxu1 %v1660_v4 }
 0x94f   :  { %1229 = vmatpush.msrb.mxu2 %v1711_v38 }
 0x950   :  { %1157 = vmatpush.msrb.mxu1 %v1668_v5 }
 0x951   :  { %1230 = vmatpush.msrb.mxu2 %v1716_v39 }
 0x953   :  { %1231 = vmatpush.msrb.mxu2 %v1721_v40 }
 0x955   :  { %1232 = vmatpush.msrb.mxu2 %v1726_v41 }
 0x957   :  { %1233 = vmatpush.msrb.mxu2 %v1731_v42 }
 0x959   :  { %1234 = vmatpush.msrb.mxu2 %v1749_v47 }
 0x9c6   :  { %v718_v3 = vpop.f32.mrf.mxu1 }
 0x9c7   :  { %v721_v36 = vadd.f32 %v718_v3, %v698_v2 }
 0x9c9   :  { %v722_v37 = vadd.f32 %v1686_v9, %v721_v36 }
 0x9cb   :  { %1449 = vtanh.f32 %v722_v37  ;;  %v1362_v40 = vmul.f32 -1.442695, %v722_v37 }
 0x9cd   :  { %v649_v4 = vpop.f32.mrf.mxu2 }
 0x9ce   :  { %v650_v38 = vadd.f32 %v1784_v50, %v649_v4 }
 0x9d0   :  { %1451 = vtanh.f32 %v650_v38  ;;  %v1360_v53 = vmul.f32 -1.442695, %v650_v38 }
 0x9d1   :  { %v1450_v5 = vpop.eup %1449  ;;  %1453 = vpow2.f32 %v1362_v40 }
 0x9d2   :  { %745 = vrot.lane.b32.xlu2 %v1450_v5, %s1580_s27 }
 0x9d6   :  { %v1452_v39 = vpop.eup %1451 }
 0x9d7   :  { %674 = vrot.lane.b32.xlu0 %v1452_v39, %s1580_s27  ;;  %v1454_v41 = vpop.eup %1453 }
 0x9d8   :  { %v726_v42 = vadd.f32 1.0, %v1454_v41  ;;  %v845_v41 = vld [vmem:[#allocation2 + $0xa] sm:$0x3] }
 0x9da   :  { %1455 = vrcp.f32 %v726_v42  ;;  %v738_v61 = vand.u32 2147483648, %v726_v42  ;;  %vm732_vm2 = vweird.f32 %v726_v42  ;;  %v736_v62 = vand.u32 2147483647, %v726_v42 }
 0x9db   :  { %1457 = vpow2.f32 %v1360_v53 }
 0x9dc   :  { %v739_v6 = vor.u32 1.1754944e-38, %v738_v61  ;;  %vm737_vm1 = vcmp.eq.f32.partialorder %v736_v62, 8.507059e+37 }
 0x9e0   :  { %v1456_v47 = vpop.eup %1455 }
 0x9e1   :  { %v728_v17 = vmul.f32 %v1456_v47, %v726_v42  ;;  %vm733_vm15 = vweird.f32 %v1456_v47  ;;  %v1458_v60 = vpop.eup %1457 }
 0x9e2   :  { %vm734_vm3 = vmor %vm732_vm2, %vm733_vm15  ;;  %v655_v63 = vadd.f32 1.0, %v1458_v60 }
 0x9e3   :  { %v729_v32 = vsub.f32 1.0, %v728_v17 }
 0x9e4   :  { %1459 = vrcp.f32 %v655_v63  ;;  %v667_v19 = vand.u32 2147483648, %v655_v63  ;;  %vm661_vm10 = vweird.f32 %v655_v63  ;;  %v665_v59 = vand.u32 2147483647, %v655_v63 }
 0x9e5   :  { %v730_v57 = vmul.f32 %v1456_v47, %v729_v32 }
 0x9e6   :  { %v668_v22 = vor.u32 1.1754944e-38, %v667_v19  ;;  %vm666_vm12 = vcmp.eq.f32.partialorder %v665_v59, 8.507059e+37 }
 0x9e7   :  { %v731_v58 = vadd.f32 %v1456_v47, %v730_v57 }
 0x9e9   :  { %v735_v0 = vsel %vm734_vm3, %v1456_v47, %v731_v58 }
 0x9ea   :  { %v740_v10 = vsel %vm737_vm1, %v739_v6, %v735_v0  ;;  %v1460_v12 = vpop.eup %1459 }
 0x9eb   :  { %v657_v15 = vmul.f32 %v1460_v12, %v655_v63  ;;  %vm662_vm6 = vweird.f32 %v1460_v12  ;;  %v743_v11 = vmul.f32 %v740_v10, %v1983_v1 }
 0x9ec   :  { %vm663_vm11 = vmor %vm661_vm10, %vm662_vm6 }
 0x9ed   :  { %v658_v16 = vsub.f32 1.0, %v657_v15 }
 0x9ef   :  { %v659_v18 = vmul.f32 %v1460_v12, %v658_v16 }
 0x9f1   :  { %v660_v55 = vadd.f32 %v1460_v12, %v659_v18 }
 0x9f3   :  { %v664_v20 = vsel %vm663_vm11, %v1460_v12, %v660_v55 }
 0x9f4   :  { %v669_v26 = vsel %vm666_vm12, %v668_v22, %v664_v20  ;;  %v907_v22 = vsel %vm844_vm5, 1, %v1582_v29 }
 0x9f5   :  { %v672_v49 = vmul.f32 %v669_v26, %v1993_v43 }
 0xa2c   :  { %v746_v7 = vpop.permute.xlu2 %745 }
 0xa2d   :  { %v748_v48 = vmul.f32 %v746_v7, %v740_v10 }
 0xa2f   :  { %750 = vrot.lane.b32.xlu1 %v748_v48, %s1581_s28 }
 0xa37   :  { %762 = vperm.xlu1 %1387, %v760_v35  }
 0xa49   :  { %v675_v23 = vpop.permute.xlu0 %674 }
 0xa4a   :  { %v677_v27 = vmul.f32 %v675_v23, %v669_v26 }
 0xa4c   :  { %679 = vrot.lane.b32.xlu2 %v677_v27, %s1581_s28 }
 0xaa1   :  { %v751_v30 = vpop.permute.xlu1 %750 }
 0xaa2   :  { %v1986_v33 = vadd.f32 %v751_v30, %v743_v11 }
 0xaa4   :  { %1461 = vtanh.f32 %v1986_v33 }
 0xaa6   :  { %v680_v13 = vpop.permute.xlu2 %679 }
 0xaa7   :  { %v1996_v52 = vadd.f32 %v680_v13, %v672_v49 }
 0xaa9   :  { %1463 = vtanh.f32 %v1996_v52  ;;  %v2011_v28 = vpop.permute.xlu1 %762  ;;  %v2036_v34 = vsel %vm617_vm14, %v1996_v52, %v1993_v43 }
 0xaaa   :  { %v1462_v21 = vpop.eup %1461  ;;  %vm764_vm13 = vcmp.eq.s32.totalorder %v2011_v28, 1 }
 0xaab   :  { %756 = vrot.lane.b32.xlu0 %v1462_v21, %s1580_s27 }
 0xaaf   :  { %v1464_v24 = vpop.eup %1463 }
 0xab0   :  { %685 = vrot.lane.b32.xlu2 %v1464_v24, %s1580_s27 }
 0xb0a   :  { %v686_v2 = vpop.permute.xlu2 %685 }
 0xb0b   :  { %v2001_v3 = vmul.f32 %v686_v2, %v669_v26 }
 0xb0d   :  { %v2007_v25 = vsel %vm617_vm14, %v2001_v3, %v1942_v46 }
 0xb0e   :  { %772 = vrot.lane.b32.xlu1 %v2007_v25, %s1580_s27 }
 0xb1d   :  { %v757_v36 = vpop.permute.xlu0 %756 }
 0xb1e   :  { %v759_v37 = vmul.f32 %v757_v36, %v740_v10 }
 0xb20   :  { %v2017_v4 = vsel %vm764_vm13, %v759_v37, %v1952_v44  ;;  %v2046_v37 = vsel %vm764_vm13, %v1986_v33, %v1983_v1 }
 0xb21   :  { %768 = vrot.lane.b32.xlu0 %v2017_v4, %s1581_s28 }
 0xb80   :  { %v773_v38 = vpop.permute.xlu1 %772 }
 0xb93   :  { %v769_v46 = vpop.permute.xlu0 %768 }
 0xb94   :  { %v775_v5 = vsel %vm105_vm8, %v769_v46, %v773_v38  ;;  %1365 = vmatmul.msk.f32.vlgmr.msra.gmra.mxu3 %vm105_vm8, %v769_v46 }
 0xb95   :  { %1363 = vmatmul.msk.f32.vlgmr.msra.gmra.mxu1 %vm186_vm9, %v775_v5 }
 0xc12   :  { %v796_v39 = vpop.f32.mrf.mxu1 }
 0xc13   :  { %v797_v40 = vadd.f32 %v1784_v50, %v796_v39 }
 0xc15   :  { %1465 = vtanh.f32 %v797_v40  ;;  %v1364_v60 = vmul.f32 -1.442695, %v797_v40 }
 0xc17   :  { %v865_v42 = vpop.f32.mrf.mxu3 }
 0xc18   :  { %v868_v47 = vadd.f32 %v865_v42, %v845_v41 }
 0xc1a   :  { %v869_v44 = vadd.f32 %v1686_v9, %v868_v47 }
 0xc1b   :  { %v1466_v17 = vpop.eup %1465 }
 0xc1c   :  { %1467 = vtanh.f32 %v869_v44  ;;  %821 = vrot.lane.b32.xlu0 %v1466_v17, %s1580_s27  ;;  %v1366_v32 = vmul.f32 -1.442695, %v869_v44 }
 0xc1e   :  { %1469 = vpow2.f32 %v1366_v32 }
 0xc22   :  { %v1468_v53 = vpop.eup %1467 }
 0xc23   :  { %892 = vrot.lane.b32.xlu2 %v1468_v53, %s1580_s27 }
 0xc24   :  { %v1470_v57 = vpop.eup %1469 }
 0xc25   :  { %v873_v58 = vadd.f32 1.0, %v1470_v57  ;;  %v992_v57 = vld [vmem:[#allocation2 + $0xc] sm:$0x3] }
 0xc27   :  { %1471 = vrcp.f32 %v873_v58  ;;  %v885_v10 = vand.u32 2147483648, %v873_v58  ;;  %vm879_vm2 = vweird.f32 %v873_v58  ;;  %v883_v12 = vand.u32 2147483647, %v873_v58 }
 0xc28   :  { %1473 = vpow2.f32 %v1364_v60 }
 0xc29   :  { %v886_v15 = vor.u32 1.1754944e-38, %v885_v10  ;;  %vm884_vm1 = vcmp.eq.f32.partialorder %v883_v12, 8.507059e+37 }
 0xc2d   :  { %v1472_v61 = vpop.eup %1471 }
 0xc2e   :  { %v875_v62 = vmul.f32 %v1472_v61, %v873_v58  ;;  %v1474_v63 = vpop.eup %1473  ;;  %vm880_vm15 = vweird.f32 %v1472_v61 }
 0xc2f   :  { %v802_v0 = vadd.f32 1.0, %v1474_v63  ;;  %vm881_vm3 = vmor %vm879_vm2, %vm880_vm15 }
 0xc30   :  { %v876_v6 = vsub.f32 1.0, %v875_v62 }
 0xc31   :  { %1475 = vrcp.f32 %v802_v0  ;;  %v814_v26 = vand.u32 2147483648, %v802_v0  ;;  %vm808_vm10 = vweird.f32 %v802_v0  ;;  %v812_v27 = vand.u32 2147483647, %v802_v0 }
 0xc32   :  { %v877_v9 = vmul.f32 %v1472_v61, %v876_v6 }
 0xc33   :  { %v815_v30 = vor.u32 1.1754944e-38, %v814_v26  ;;  %vm813_vm12 = vcmp.eq.f32.partialorder %v812_v27, 8.507059e+37 }
 0xc34   :  { %v878_v7 = vadd.f32 %v1472_v61, %v877_v9 }
 0xc36   :  { %v882_v35 = vsel %vm881_vm3, %v1472_v61, %v878_v7 }
 0xc37   :  { %v1476_v48 = vpop.eup %1475  ;;  %v887_v55 = vsel %vm884_vm1, %v886_v15, %v882_v35 }
 0xc38   :  { %v804_v16 = vmul.f32 %v1476_v48, %v802_v0  ;;  %vm809_vm6 = vweird.f32 %v1476_v48  ;;  %v890_v38 = vmul.f32 %v887_v55, %v2046_v37 }
 0xc39   :  { %vm810_vm11 = vmor %vm808_vm10, %vm809_vm6 }
 0xc3a   :  { %v805_v59 = vsub.f32 1.0, %v804_v16 }
 0xc3c   :  { %v806_v20 = vmul.f32 %v1476_v48, %v805_v59 }
 0xc3e   :  { %v807_v23 = vadd.f32 %v1476_v48, %v806_v20 }
 0xc40   :  { %v811_v11 = vsel %vm810_vm11, %v1476_v48, %v807_v23 }
 0xc41   :  { %v816_v13 = vsel %vm813_vm12, %v815_v30, %v811_v11 }
 0xc42   :  { %v819_v24 = vmul.f32 %v816_v13, %v2036_v34 }
 0xc7d   :  { %v893_v18 = vpop.permute.xlu2 %892 }
 0xc7e   :  { %v895_v19 = vmul.f32 %v893_v18, %v887_v55 }
 0xc80   :  { %897 = vrot.lane.b32.xlu1 %v895_v19, %s1581_s28 }
 0xc88   :  { %909 = vperm.xlu1 %1387, %v907_v22  }
 0xc8e   :  { %v822_v49 = vpop.permute.xlu0 %821 }
 0xc8f   :  { %v824_v21 = vmul.f32 %v822_v49, %v816_v13 }
 0xc91   :  { %826 = vrot.lane.b32.xlu2 %v824_v21, %s1581_s28 }
 0xceb   :  { %v827_v2 = vpop.permute.xlu2 %826 }
 0xcec   :  { %v2039_v36 = vadd.f32 %v827_v2, %v819_v24 }
 0xcee   :  { %1477 = vtanh.f32 %v2039_v36 }
 0xcf2   :  { %v898_v46 = vpop.permute.xlu1 %897 }
 0xcf3   :  { %v2049_v5 = vadd.f32 %v898_v46, %v890_v38 }
 0xcf4   :  { %v1478_v43 = vpop.eup %1477 }
 0xcf5   :  { %1479 = vtanh.f32 %v2049_v5  ;;  %832 = vrot.lane.b32.xlu2 %v1478_v43, %s1580_s27 }
 0xcfa   :  { %v2064_v33 = vpop.permute.xlu1 %909 }
 0xcfb   :  { %v1480_v52 = vpop.eup %1479  ;;  %vm911_vm15 = vcmp.eq.s32.totalorder %v2064_v33, 1 }
 0xcfc   :  { %903 = vrot.lane.b32.xlu0 %v1480_v52, %s1580_s27  ;;  %v2091_v52 = vld [vmem:[%s2252_s1] sm:$0x3] }
 0xd4f   :  { %v833_v39 = vpop.permute.xlu2 %832 }
 0xd50   :  { %v2054_v40 = vmul.f32 %v833_v39, %v816_v13 }
 0xd52   :  { %v2060_v1 = vsel %vm764_vm13, %v2054_v40, %v2007_v25 }
 0xd53   :  { %919 = vrot.lane.b32.xlu1 %v2060_v1, %s1580_s27 }
 0xd6e   :  { %v904_v41 = vpop.permute.xlu0 %903 }
 0xd6f   :  { %v906_v42 = vmul.f32 %v904_v41, %v887_v55  ;;  %v2099_v41 = vsel %vm764_vm13, %v2039_v36, %v2036_v34 }
 0xd71   :  { %v2070_v47 = vsel %vm911_vm15, %v906_v42, %v2017_v4  ;;  %v2081_v4 = vld [vmem:[%s2255_s4] ss:$0 sm:$0xff] }
 0xd72   :  { %915 = vrot.lane.b32.xlu0 %v2070_v47, %s1581_s28 }
 0xdc5   :  { %v920_v44 = vpop.permute.xlu1 %919 }
 0xde4   :  { %v916_v25 = vpop.permute.xlu0 %915 }
 0xde5   :  { %v922_v17 = vsel %vm105_vm8, %v916_v25, %v920_v44  ;;  %1369 = vmatmul.msk.f32.vlgmr.msra.gmra.mxu2 %vm105_vm8, %v916_v25 }
 0xde6   :  { %1367 = vmatmul.msk.f32.vlgmr.msra.gmra.mxu0 %vm186_vm9, %v922_v17  ;;  %v2109_v17 = vsel %vm911_vm15, %v2049_v5, %v2046_v37 }
 0xe63   :  { %v943_v53 = vpop.f32.mrf.mxu0 }
 0xe64   :  { %v944_v32 = vadd.f32 %v1784_v50, %v943_v53 }
 0xe66   :  { %1481 = vtanh.f32 %v944_v32  ;;  %v1368_v0 = vmul.f32 -1.442695, %v944_v32 }
 0xe68   :  { %v1012_v58 = vpop.f32.mrf.mxu2 }
 0xe69   :  { %v1015_v60 = vadd.f32 %v1012_v58, %v992_v57 }
 0xe6b   :  { %v1016_v61 = vadd.f32 %v2081_v4, %v1015_v60 }
 0xe6c   :  { %v1482_v62 = vpop.eup %1481 }
 0xe6d   :  { %1483 = vtanh.f32 %v1016_v61  ;;  %968 = vrot.lane.b32.xlu2 %v1482_v62, %s1580_s27  ;;  %v1370_v48 = vmul.f32 -1.442695, %v1016_v61 }
 0xe6e   :  { %1485 = vpow2.f32 %v1368_v0 }
 0xe73   :  { %v1484_v63 = vpop.eup %1483 }
 0xe74   :  { %1039 = vrot.lane.b32.xlu0 %v1484_v63, %s1580_s27  ;;  %v1486_v50 = vpop.eup %1485 }
 0xe75   :  { %v949_v6 = vadd.f32 1.0, %v1486_v50 }
 0xe77   :  { %1487 = vrcp.f32 %v949_v6  ;;  %v961_v15 = vand.u32 2147483648, %v949_v6  ;;  %vm955_vm3 = vweird.f32 %v949_v6  ;;  %v959_v16 = vand.u32 2147483647, %v949_v6 }
 0xe78   :  { %1489 = vpow2.f32 %v1370_v48 }
 0xe79   :  { %v962_v19 = vor.u32 1.1754944e-38, %v961_v15  ;;  %vm960_vm5 = vcmp.eq.f32.partialorder %v959_v16, 8.507059e+37 }
 0xe7d   :  { %v1488_v9 = vpop.eup %1487 }
 0xe7e   :  { %v951_v7 = vmul.f32 %v1488_v9, %v949_v6  ;;  %vm956_vm2 = vweird.f32 %v1488_v9  ;;  %v1490_v18 = vpop.eup %1489  ;;  %v1139_v6 = vld [vmem:[#allocation2 + $0xe] sm:$0x3] }
 0xe7f   :  { %vm957_vm1 = vmor %vm955_vm3, %vm956_vm2  ;;  %v1020_v59 = vadd.f32 1.0, %v1490_v18  ;;  %vm991_vm2 = vcmp.gt.s32.totalorder %v2091_v52, 6 }
 0xe80   :  { %v952_v10 = vsub.f32 1.0, %v951_v7  ;;  %v1054_v39 = vsel %vm991_vm2, 1, %v1582_v29 }
 0xe81   :  { %1491 = vrcp.f32 %v1020_v59  ;;  %v1032_v13 = vand.u32 2147483648, %v1020_v59  ;;  %vm1026_vm10 = vweird.f32 %v1020_v59  ;;  %v1030_v21 = vand.u32 2147483647, %v1020_v59 }
 0xe82   :  { %v953_v12 = vmul.f32 %v1488_v9, %v952_v10 }
 0xe83   :  { %v1033_v2 = vor.u32 1.1754944e-38, %v1032_v13  ;;  %vm1031_vm12 = vcmp.eq.f32.partialorder %v1030_v21, 8.507059e+37 }
 0xe84   :  { %v954_v35 = vadd.f32 %v1488_v9, %v953_v12 }
 0xe86   :  { %v958_v55 = vsel %vm957_vm1, %v1488_v9, %v954_v35 }
 0xe87   :  { %v963_v22 = vsel %vm960_vm5, %v962_v19, %v958_v55  ;;  %v1492_v26 = vpop.eup %1491 }
 0xe88   :  { %v1022_v27 = vmul.f32 %v1492_v26, %v1020_v59  ;;  %vm1027_vm6 = vweird.f32 %v1492_v26  ;;  %v966_v42 = vmul.f32 %v963_v22, %v2099_v41 }
 0xe89   :  { %vm1028_vm11 = vmor %vm1026_vm10, %vm1027_vm6 }
 0xe8a   :  { %v1023_v11 = vsub.f32 1.0, %v1022_v27 }
 0xe8c   :  { %v1024_v30 = vmul.f32 %v1492_v26, %v1023_v11 }
 0xe8e   :  { %v1025_v49 = vadd.f32 %v1492_v26, %v1024_v30 }
 0xe90   :  { %v1029_v24 = vsel %vm1028_vm11, %v1492_v26, %v1025_v49 }
 0xe91   :  { %v1034_v46 = vsel %vm1031_vm12, %v1033_v2, %v1029_v24 }
 0xe92   :  { %v1037_v53 = vmul.f32 %v1034_v46, %v2109_v17 }
 0xec7   :  { %v969_v20 = vpop.permute.xlu2 %968 }
 0xec8   :  { %v971_v23 = vmul.f32 %v969_v20, %v963_v22 }
 0xeca   :  { %973 = vrot.lane.b32.xlu1 %v971_v23, %s1581_s28 }
 0xee6   :  { %v1040_v38 = vpop.permute.xlu0 %1039 }
 0xee7   :  { %v1042_v43 = vmul.f32 %v1040_v38, %v1034_v46 }
 0xee9   :  { %1044 = vrot.lane.b32.xlu2 %v1042_v43, %s1581_s28 }
 0xef1   :  { %1056 = vperm.xlu2 %1388, %v1054_v39  }
 0xf3c   :  { %v974_v44 = vpop.permute.xlu1 %973 }
 0xf3d   :  { %v2102_v25 = vadd.f32 %v974_v44, %v966_v42 }
 0xf3f   :  { %1493 = vtanh.f32 %v2102_v25 }
 0xf43   :  { %v1045_v32 = vpop.permute.xlu2 %1044 }
 0xf44   :  { %v2112_v57 = vadd.f32 %v1045_v32, %v1037_v53 }
 0xf45   :  { %v1494_v34 = vpop.eup %1493 }
 0xf46   :  { %1495 = vtanh.f32 %v2112_v57  ;;  %979 = vrot.lane.b32.xlu0 %v1494_v34, %s1580_s27 }
 0xf4b   :  { %v2127_v5 = vpop.permute.xlu2 %1056 }
 0xf4c   :  { %v1496_v36 = vpop.eup %1495  ;;  %vm1058_vm3 = vcmp.eq.s32.totalorder %v2127_v5, 1 }
 0xf4d   :  { %1050 = vrot.lane.b32.xlu1 %v1496_v36, %s1580_s27 }
 0xfb8   :  { %v980_v58 = vpop.permute.xlu0 %979 }
 0xfb9   :  { %v2117_v60 = vmul.f32 %v980_v58, %v963_v22 }
 0xfbb   :  { %v2123_v37 = vsel %vm911_vm15, %v2117_v60, %v2060_v1  ;;  %v985_v5 = vsel %vm911_vm15, %v2117_v60, -1.0 }
 0xfbc   :  { %1066 = vrot.lane.b32.xlu1 %v2123_v37, %s1580_s27 }
 0xfbf   :  { %v1051_v61 = vpop.permute.xlu1 %1050 }
 0xfc0   :  { %v1053_v62 = vmul.f32 %v1051_v61, %v1034_v46 }
 0xfc2   :  { %v2133_v63 = vsel %vm1058_vm3, %v1053_v62, %v2070_v47  ;;  %v2144_v47 = vld [vmem:[%s2257_s6] ss:$0 sm:$0xff] }
 0xfc3   :  { %1062 = vrot.lane.b32.xlu0 %v2133_v63, %s1581_s28 }
0x102e   :  { %v1067_v0 = vpop.permute.xlu1 %1066 }
0x1035   :  { %v1063_v1 = vpop.permute.xlu0 %1062 }
0x1036   :  { %v1069_v50 = vsel %vm105_vm8, %v1063_v1, %v1067_v0  ;;  %1373 = vmatmul.msk.f32.vlgmr.msrb.gmra.mxu1 %vm105_vm8, %v1063_v1  ;;  %v1060_v0 = vsel %vm1058_vm3, %v2112_v57, %v2109_v17 }
0x1037   :  { %1371 = vmatmul.msk.f32.vlgmr.msrb.gmra.mxu3 %vm186_vm9, %v1069_v50 }
0x10b3   :  { %v1159_v9 = vpop.f32.mrf.mxu1 }
0x10b4   :  { %v1162_v7 = vadd.f32 %v1159_v9, %v1139_v6  ;;  %v2161_v9 = vsel %vm911_vm15, %v2102_v25, %v2099_v41 }
0x10b6   :  { %v1163_v10 = vadd.f32 %v2081_v4, %v1162_v7 }
0x10b8   :  { %1497 = vtanh.f32 %v1163_v10  ;;  %v1374_v55 = vmul.f32 -1.442695, %v1163_v10 }
0x10ba   :  { %v1090_v48 = vpop.f32.mrf.mxu3 }
0x10bb   :  { %v1091_v12 = vadd.f32 %v2144_v47, %v1090_v48 }
0x10bd   :  { %1499 = vtanh.f32 %v1091_v12  ;;  %v1372_v16 = vmul.f32 -1.442695, %v1091_v12 }
0x10be   :  { %v1498_v35 = vpop.eup %1497 }
0x10bf   :  { %1186 = vrot.lane.b32.xlu0 %v1498_v35, %s1580_s27  ;;  %1501 = vpow2.f32 %v1372_v16 }
0x10c3   :  { %v1500_v15 = vpop.eup %1499 }
0x10c4   :  { %1115 = vrot.lane.b32.xlu2 %v1500_v15, %s1580_s27 }
0x10c5   :  { %v1502_v18 = vpop.eup %1501 }
0x10c6   :  { %v1096_v4 = vadd.f32 1.0, %v1502_v18 }
0x10c8   :  { %1503 = vrcp.f32 %v1096_v4  ;;  %v1108_v11 = vand.u32 2147483648, %v1096_v4  ;;  %vm1102_vm5 = vweird.f32 %v1096_v4  ;;  %v1106_v30 = vand.u32 2147483647, %v1096_v4 }
0x10c9   :  { %1505 = vpow2.f32 %v1374_v55 }
0x10ca   :  { %v1109_v21 = vor.u32 1.1754944e-38, %v1108_v11  ;;  %vm1107_vm10 = vcmp.eq.f32.partialorder %v1106_v30, 8.507059e+37 }
0x10ce   :  { %v1504_v19 = vpop.eup %1503 }
0x10cf   :  { %v1098_v59 = vmul.f32 %v1504_v19, %v1096_v4  ;;  %v1506_v20 = vpop.eup %1505  ;;  %vm1103_vm1 = vweird.f32 %v1504_v19 }
0x10d0   :  { %v1167_v23 = vadd.f32 1.0, %v1506_v20  ;;  %vm1104_vm6 = vmor %vm1102_vm5, %vm1103_vm1  ;;  %vm1138_vm5 = vcmp.gt.s32.totalorder %v2091_v52, 7 }
0x10d1   :  { %v1099_v22 = vsub.f32 1.0, %v1098_v59  ;;  %v1201_v62 = vsel %vm1138_vm5, 1, %v1582_v29  ;;  %v249_v59 = vsel %vm175_vm7, %v1808_v54, -1.0 }
0x10d2   :  { %1507 = vrcp.f32 %v1167_v23  ;;  %v1179_v44 = vand.u32 2147483648, %v1167_v23  ;;  %vm1173_vm12 = vweird.f32 %v1167_v23  ;;  %v1177_v53 = vand.u32 2147483647, %v1167_v23 }
0x10d3   :  { %v1100_v26 = vmul.f32 %v1504_v19, %v1099_v22 }
0x10d4   :  { %v1180_v34 = vor.u32 1.1754944e-38, %v1179_v44  ;;  %vm1178_vm1 = vcmp.eq.f32.partialorder %v1177_v53, 8.507059e+37 }
0x10d5   :  { %v1101_v27 = vadd.f32 %v1504_v19, %v1100_v26 }
0x10d7   :  { %v1105_v13 = vsel %vm1104_vm6, %v1504_v19, %v1101_v27 }
0x10d8   :  { %v1508_v49 = vpop.eup %1507  ;;  %v1110_v2 = vsel %vm1107_vm10, %v1109_v21, %v1105_v13 }
0x10d9   :  { %v1169_v38 = vmul.f32 %v1508_v49, %v1167_v23  ;;  %vm1174_vm11 = vweird.f32 %v1508_v49  ;;  %v1113_v52 = vmul.f32 %v1110_v2, %v2161_v9 }
0x10da   :  { %vm1175_vm2 = vmor %vm1173_vm12, %vm1174_vm11  ;;  %vm254_vm11 = vcmask 254976  }
0x10db   :  { %v1170_v43 = vsub.f32 1.0, %v1169_v38  ;;  %v397_v38 = vsel %vm323_vm4, %v1867_v51, -1.0  ;;  %vm1321_vm4 = vcmask 130048  }
0x10dd   :  { %v1171_v39 = vmul.f32 %v1508_v49, %v1170_v43  ;;  %v838_v43 = vsel %vm764_vm13, %v2054_v40, -1.0  ;;  %v544_v40 = vsel %vm470_vm0, %v1936_v31, -1.0  ;;  %v1284_v31 = vld [vmem:[%s2258_s7] sm:$0xff] }
0x10df   :  { %v1172_v42 = vadd.f32 %v1508_v49, %v1171_v39 }
0x10e1   :  { %v1176_v32 = vsel %vm1175_vm2, %v1508_v49, %v1172_v42 }
0x10e2   :  { %v1181_v58 = vsel %vm1178_vm1, %v1180_v34, %v1176_v32  ;;  %v1287_v34 = vld [vmem:[%s2258_s7 + $0x18] sm:$0xff] }
0x10e3   :  { %v1184_v1 = vmul.f32 %v1181_v58, %v1060_v0  ;;  %1310 = vmatpush.msrb.mxu0 %v1287_v34 }
0x111e   :  { %v1116_v24 = vpop.permute.xlu2 %1115 }
0x111f   :  { %v1118_v46 = vmul.f32 %v1116_v24, %v1110_v2 }
0x1121   :  { %1120 = vrot.lane.b32.xlu1 %v1118_v46, %s1581_s28 }
0x1131   :  { %v1187_v36 = vpop.permute.xlu0 %1186 }
0x1132   :  { %v1189_v61 = vmul.f32 %v1187_v36, %v1181_v58  ;;  %v1286_v36 = vld [vmem:[%s2258_s7 + $0x10] sm:$0xff] }
0x1133   :  { %1311 = vmatpush.msrb.mxu0 %v1286_v36 }
0x1134   :  { %1191 = vrot.lane.b32.xlu2 %v1189_v61, %s1581_s28 }
0x1135   :  { %1312 = vmatpush.msrb.mxu0 %v1285_v14 }
0x1137   :  { %1313 = vmatpush.msrb.mxu0 %v1284_v31 }
0x113c   :  { %1203 = vperm.xlu2 %1388, %v1201_v62  }
0x118e   :  { %v1192_v50 = vpop.permute.xlu2 %1191 }
0x118f   :  { %v1194_v6 = vadd.f32 %v1192_v50, %v1184_v1 }
0x1191   :  { %1509 = vtanh.f32 %v1194_v6  ;;  %v1392_v6 = vld [vmem:[%s2259_s8] ss:$0 sm:$0xff] }
0x1193   :  { %v1121_v7 = vpop.permute.xlu1 %1120 }
0x1194   :  { %v2164_v29 = vadd.f32 %v1121_v7, %v1113_v52 }
0x1196   :  { %1511 = vtanh.f32 %v2164_v29  ;;  %v2169_v57 = vpop.permute.xlu2 %1203  ;;  %v1131_v56 = vsel %vm1058_vm3, %v2164_v29, %v2161_v9 }
0x1197   :  { %v1510_v10 = vpop.eup %1509  ;;  %vm1205_vm6 = vcmp.eq.s32.totalorder %v2169_v57, 1 }
0x1198   :  { %1197 = vrot.lane.b32.xlu1 %v1510_v10, %s1580_s27 }
0x119c   :  { %v1512_v17 = vpop.eup %1511 }
0x119d   :  { %1126 = vrot.lane.b32.xlu0 %v1512_v17, %s1580_s27 }
0x120a   :  { %v1198_v48 = vpop.permute.xlu1 %1197 }
0x120b   :  { %v1200_v12 = vmul.f32 %v1198_v48, %v1181_v58 }
0x120d   :  { %v1206_v41 = vsel %vm1205_vm6, %v1200_v12, %v2133_v63 }
0x120e   :  { %1208 = vrot.lane.b32.xlu0 %v1206_v41, %s1581_s28 }
0x120f   :  { %v1127_v25 = vpop.permute.xlu0 %1126 }
0x1210   :  { %v1129_v35 = vmul.f32 %v1127_v25, %v1110_v2 }
0x1212   :  { %v1130_v15 = vsel %vm1058_vm3, %v1129_v35, %v2123_v37  ;;  %v691_v37 = vsel %vm617_vm14, %v2001_v3, -1.0  ;;  %v1132_v20 = vsel %vm1058_vm3, %v1129_v35, -1.0 }
0x1213   :  { %1212 = vrot.lane.b32.xlu1 %v1130_v15, %s1580_s27 }
0x1280   :  { %v1209_v16 = vpop.permute.xlu0 %1208 }
0x1285   :  { %v1213_v18 = vpop.permute.xlu1 %1212 }
0x1286   :  { %v1215_v4 = vsel %vm105_vm8, %v1209_v16, %v1213_v18 }
0x1287   :  { %1375 = vmatmul.msk.f32.vlgmr.msrb.gmra.mxu2 %vm186_vm9, %v1215_v4 }
0x130a   :  { %v1236_v55 = vpop.f32.mrf.mxu2 }
0x130b   :  { %v1237_v19 = vadd.f32 %v2144_v47, %v1236_v55 }
0x130d   :  { %1513 = vtanh.f32 %v1237_v19  ;;  %v1376_v47 = vmul.f32 -1.442695, %v1237_v19 }
0x130f   :  { %1515 = vpow2.f32 %v1376_v47 }
0x1313   :  { %v1514_v63 = vpop.eup %1513 }
0x1314   :  { %1261 = vrot.lane.b32.xlu2 %v1514_v63, %s1580_s27 }
0x1315   :  { %v1516_v22 = vpop.eup %1515 }
0x1316   :  { %v1242_v23 = vadd.f32 1.0, %v1516_v22 }
0x1318   :  { %1517 = vrcp.f32 %v1242_v23  ;;  %v1254_v8 = vand.u32 2147483648, %v1242_v23  ;;  %vm1248_vm9 = vweird.f32 %v1242_v23  ;;  %v1252_v3 = vand.u32 2147483647, %v1242_v23 }
0x131a   :  { %v1255_v49 = vor.u32 1.1754944e-38, %v1254_v8  ;;  %vm1253_vm10 = vcmp.eq.f32.partialorder %v1252_v3, 8.507059e+37 }
0x131c   :  { %251 = vrot.lane.b32.xlu2 %v249_v59, %s1581_s28 }
0x131e   :  { %v1518_v45 = vpop.eup %1517 }
0x131f   :  { %v1244_v54 = vmul.f32 %v1518_v45, %v1242_v23  ;;  %vm1249_vm7 = vweird.f32 %v1518_v45 }
0x1320   :  { %vm1250_vm14 = vmor %vm1248_vm9, %vm1249_vm7 }
0x1321   :  { %v1245_v26 = vsub.f32 1.0, %v1244_v54 }
0x1323   :  { %v1246_v27 = vmul.f32 %v1518_v45, %v1245_v26 }
0x1324   :  { %693 = vrot.lane.b32.xlu2 %v691_v37, %s1581_s28 }
0x1325   :  { %v1247_v11 = vadd.f32 %v1518_v45, %v1246_v27 }
0x1327   :  { %v1251_v30 = vsel %vm1250_vm14, %v1518_v45, %v1247_v11 }
0x1328   :  { %v1256_v21 = vsel %vm1253_vm10, %v1255_v49, %v1251_v30 }
0x1329   :  { %v1259_v51 = vmul.f32 %v1256_v21, %v1131_v56 }
0x132c   :  { %1134 = vrot.lane.b32.xlu2 %v1132_v20, %s1581_s28 }
0x136e   :  { %v1262_v13 = vpop.permute.xlu2 %1261 }
0x136f   :  { %v1264_v24 = vmul.f32 %v1262_v13, %v1256_v21 }
0x1371   :  { %1266 = vrot.lane.b32.xlu0 %v1264_v24, %s1581_s28 }
0x1376   :  { %v252_v2 = vpop.permute.xlu2 %251 }
0x1377   :  { %255 = vst.msk [vmem:[#allocation3] sm:$0x3] %vm254_vm11, %v252_v2 }
0x1379   :  { %399 = vrot.lane.b32.xlu0 %v397_v38, %s1581_s28 }
0x137e   :  { %v694_v46 = vpop.permute.xlu2 %693 }
0x137f   :  { %696 = vst.msk [vmem:[#allocation3 + $0x6] sm:$0x3] %vm254_vm11, %v694_v46 }
0x1381   :  { %840 = vrot.lane.b32.xlu0 %v838_v43, %s1581_s28 }
0x1386   :  { %v1135_v39 = vpop.permute.xlu2 %1134 }
0x1387   :  { %1137 = vst.msk [vmem:[#allocation3 + $0xc] sm:$0x3] %vm254_vm11, %v1135_v39 }
0x13e3   :  { %v1267_v42 = vpop.permute.xlu0 %1266 }
0x13e4   :  { %v1269_v44 = vadd.f32 %v1267_v42, %v1259_v51 }
0x13e6   :  { %1519 = vtanh.f32 %v1269_v44 }
0x13eb   :  { %v400_v53 = vpop.permute.xlu0 %399 }
0x13ec   :  { %v1520_v32 = vpop.eup %1519  ;;  %402 = vst.msk [vmem:[#allocation3 + $0x2] sm:$0x3] %vm254_vm11, %v400_v53 }
0x13ed   :  { %1272 = vrot.lane.b32.xlu1 %v1520_v32, %s1580_s27 }
0x13f3   :  { %v841_v28 = vpop.permute.xlu0 %840 }
0x13f4   :  { %843 = vst.msk [vmem:[#allocation3 + $0x8] sm:$0x3] %vm254_vm11, %v841_v28 }
0x13f5   :  { %546 = vrot.lane.b32.xlu1 %v544_v40, %s1581_s28 }
0x13fd   :  { %987 = vrot.lane.b32.xlu1 %v985_v5, %s1581_s28 }
0x145f   :  { %v1273_v33 = vpop.permute.xlu1 %1272 }
0x1460   :  { %v1275_v60 = vmul.f32 %v1273_v33, %v1256_v21 }
0x1462   :  { %v1276_v58 = vsel %vm1205_vm6, %v1275_v60, -1.0 }
0x1463   :  { %1278 = vrot.lane.b32.xlu0 %v1276_v58, %s1581_s28  ;;  %s1330_s28 = sshll.u32 %s2260_s9, 4  ;;  %s1331_s28 = int_to_ptr.hbm [resolvable:$true] %s1330_s28 }
0x1467   :  { %v547_v61 = vpop.permute.xlu1 %546 }
0x1468   :  { %549 = vst.msk [vmem:[#allocation3 + $0x4] sm:$0x3] %vm254_vm11, %v547_v61 }
0x146f   :  { %v988_v62 = vpop.permute.xlu1 %987  ;;  %v1282_v0 = vld [vmem:[#allocation3] sm:$0xff] }
0x1470   :  { %990 = vst.msk [vmem:[#allocation3 + $0xa] sm:$0x3] %vm254_vm11, %v988_v62  ;;  %1377 = vmatmul.msk.f32.vlgmr.msrb.gmra.mxu0 %vm105_vm8, %v1282_v0 }
0x14d5   :  { %v1279_v1 = vpop.permute.xlu0 %1278 }
0x14d6   :  { %1281 = vst.msk [vmem:[#allocation3 + $0xe] sm:$0x3] %vm254_vm11, %v1279_v1 }
0x14dd   :  { %v1283_v50 = vld [vmem:[#allocation3 + $0x8] sm:$0xff] }
0x14de   :  { %1378 = vmatmul.msk.f32.gmra.mxu0 %vm105_vm8, %v1283_v50 }
0x14ed   :  { %v1315_v9 = vpop.f32.mrf.mxu0 }
0x14ee   :  { %v1316_v52 = vadd.f32 %v1392_v6, %v1315_v9 }
0x14f0   :  { %1322 = vst.msk [vmem:[#allocation7] sm:$0xff] %vm1321_vm4, %v1316_v52 }
0x155b   :  { %v1318_v7 = vpop.f32.mrf.mxu0 }
0x155c   :  { %v1319_v29 = vadd.f32 %v1392_v6, %v1318_v7 }
0x155e   :  { %1323 = vst.msk [vmem:[#allocation7 + $0x8] sm:$0xff] %vm1321_vm4, %v1319_v29 }
0x155f   :  { %1336 = dma.vmem_to_hbm [thread:$0]  %s1329_s3, 256, %s1331_s28, [#allocation6], %s1577_s14, %s1577_s14, %s1578_s15  }
0x1560   :  { %1574 = dma.done.wait [#allocation6], 256  }
0x1561   :  { %1575 = vsyncadd [#allocation6], 4294967040 }
0x1562   :  { %1341 = vsyncpa [#allocation5], 1 }
0x1563   :  { %1342 = vsyncpa [#allocation6], 1 }

</bundles_post_ra>
